<compile_context>
chip_gen: v7x
topology: tpu7x:2x2x1
jax: 0.10.0
libtpu: 0.0.40
codegen_flags: <defaults>
</compile_context>

<pallas_src>
import functools
import math

import jax
import jax.numpy as jnp
from jax.experimental import pallas as pl
from jax.experimental.pallas import tpu as pltpu

BIT_WIDTH = 8
QMAX = float(2 ** (BIT_WIDTH - 1) - 1)   # 127
QMIN = -float(2 ** (BIT_WIDTH - 1))      # -128


# ---------------------------------------------------------------------------
# Per-generation VMEM budget / tile caps
# ---------------------------------------------------------------------------
@functools.lru_cache(maxsize=None)
def _vmem_budget():
    cap = 64 * 1024 * 1024
    try:
        info = pltpu.get_tpu_info()
        cap = int(getattr(info, "vmem_capacity_bytes", cap)) or cap
    except Exception:
        pass
    # leave headroom for Mosaic scratch and double buffering
    return max(32 * 1024 * 1024, min(cap * 3 // 4, 100 * 1024 * 1024))


@functools.lru_cache(maxsize=None)
def _token_tile_cap():
    return 512 if _vmem_budget() >= 80 * 1024 * 1024 else 256


def _pick_tile(dim, cap, align):
    """Largest tile <= cap that divides `dim` and is a multiple of `align`.

    Falls back to the full dimension (a full-extent block is always legal)."""
    if dim <= cap:
        return dim
    t = (cap // align) * align
    while t >= align:
        if dim % t == 0:
            return t
        t -= align
    return dim


def _quantize_weight(w):
    """Per-output-column symmetric int8 quantization of a (D, D) weight (hoisted).

    Returns integer values (exact in bf16) and the f32 per-column scale (1, D)."""
    amax = jnp.max(jnp.abs(w), axis=0, keepdims=True)
    s = jnp.where(amax > 0.0, amax / QMAX, 1.0).astype(jnp.float32)
    wi = jnp.clip(jnp.round(w / s), QMIN, QMAX).astype(jnp.bfloat16)
    return wi, s


# ---------------------------------------------------------------------------
# Kernel A: per-token fake quantization pre-pass (quantizer_query/key/value/output
#           and quantizer_1/2/4).  Emits bf16 integer values + f32 per-token scales so
#           downstream kernels never re-quantize and stream half the bytes.
# ---------------------------------------------------------------------------
def _token_quant_kernel(*refs, n):
    x_refs = refs[:n]
    xi_refs = refs[n:2 * n]
    s_refs = refs[2 * n:3 * n]
    for x_ref, xi_ref, s_ref in zip(x_refs, xi_refs, s_refs):
        x = x_ref[...]
        # abs-max reduced over batch AND the full feature (head*d_k) axis.
        amax = jnp.max(jnp.abs(x), axis=(0, 2), keepdims=True)          # (1, tt, 1)
        s = jnp.where(amax > 0.0, amax / QMAX, 1.0)
        inv_s = 1.0 / s                                                  # tiny reciprocal
        xi = jnp.clip(jnp.round(x * inv_s), QMIN, QMAX)                  # exact ints (f32)
        xi_ref[...] = xi.astype(jnp.bfloat16)
        s_ref[...] = s[0]                                                # (tt, 1)


def quant_tokens(xs):
    """Per-token fake quant of a tuple of (B, T, D) activations.

    Returns (ints_bf16 tuple, scales_f32 tuple); scales have shape (T, 1)."""
    n = len(xs)
    B, T, D = xs[0].shape
    tt = _pick_tile(T, _token_tile_cap(), 8)
    grid = (T // tt,)
    x_spec = pl.BlockSpec((B, tt, D), lambda i: (0, i, 0))
    s_spec = pl.BlockSpec((tt, 1), lambda i: (i, 0))
    out_shape = tuple([jax.ShapeDtypeStruct((B, T, D), jnp.bfloat16) for _ in range(n)]
                      + [jax.ShapeDtypeStruct((T, 1), jnp.float32) for _ in range(n)])
    outs = pl.pallas_call(
        functools.partial(_token_quant_kernel, n=n),
        out_shape=out_shape,
        grid=grid,
        in_specs=[x_spec] * n,
        out_specs=tuple([x_spec] * n + [s_spec] * n),
        compiler_params=pltpu.CompilerParams(
            dimension_semantics=("parallel",),
            vmem_limit_bytes=_vmem_budget()),
    )(*xs)
    return outs[:n], outs[n:]


# ---------------------------------------------------------------------------
# Kernel B: fused fake-quantized projections  out_i = (xi_i @ wi_i) * (s_x_i * s_w_i)
#           (activations and weights pre-quantized; scales factored out of the matmul)
# ---------------------------------------------------------------------------
def _proj_kernel(*refs, n):
    xi_refs = refs[:n]
    sx_refs = refs[n:2 * n]
    w_refs = refs[2 * n:3 * n]
    sw_refs = refs[3 * n:4 * n]
    o_refs = refs[4 * n:5 * n]
    for xi_ref, sx_ref, w_ref, sw_ref, o_ref in zip(xi_refs, sx_refs, w_refs, sw_refs, o_refs):
        B, tt, D = xi_ref.shape
        tn = o_ref.shape[-1]
        # integer matmul on the MXU with bf16 operands (exact), f32 accumulation.
        y = jnp.dot(xi_ref[...].reshape(B * tt, D), w_ref[...],
                    preferred_element_type=jnp.float32).reshape(B, tt, tn)
        # fused activation x weight scale, applied once to the f32 accumulator.
        scale = sx_ref[...].reshape(1, tt, 1) * sw_ref[...].reshape(1, 1, tn)
        o_ref[...] = y * scale


def quant_project(x_ints, x_scales, w_ints, w_scales):
    """Fused fake-quantized projections on pre-quantized activations/weights."""
    n = len(x_ints)
    B, T, D = x_ints[0].shape
    N = w_ints[0].shape[1]
    tt = _pick_tile(T, _token_tile_cap(), 8)      # token tile (sublane axis)
    tn = _pick_tile(N, 512, 128)                  # output-column tile (lane-dense)
    grid = (T // tt, N // tn)
    xi_spec = pl.BlockSpec((B, tt, D), lambda i, j: (0, i, 0))
    sx_spec = pl.BlockSpec((tt, 1), lambda i, j: (i, 0))
    w_spec = pl.BlockSpec((D, tn), lambda i, j: (0, j))
    sw_spec = pl.BlockSpec((1, tn), lambda i, j: (0, j))
    o_spec = pl.BlockSpec((B, tt, tn), lambda i, j: (0, i, j))
    return pl.pallas_call(
        functools.partial(_proj_kernel, n=n),
        out_shape=tuple(jax.ShapeDtypeStruct((B, T, N), jnp.float32) for _ in range(n)),
        grid=grid,
        in_specs=[xi_spec] * n + [sx_spec] * n + [w_spec] * n + [sw_spec] * n,
        out_specs=tuple(o_spec for _ in range(n)),
        compiler_params=pltpu.CompilerParams(
            dimension_semantics=("parallel", "parallel"),
            vmem_limit_bytes=_vmem_budget()),
    )(*x_ints, *x_scales, *w_ints, *w_scales)


# ---------------------------------------------------------------------------
# Kernel C: quantized scaled-dot-product attention, (B, T, D) layout, heads sliced
#           in-kernel, tiled over query tokens.  Q/K/V arrive pre-quantized (bf16
#           integers + per-token scales); no probability matrices are kept live
#           across heads (1/Z trick for the quantizer_3 scale).
# ---------------------------------------------------------------------------
def _attention_kernel(qi_ref, sq_ref, ki_ref, sk_ref, vi_ref, sv_ref, o_ref, *, h, d_k):
    B, tq, D = qi_ref.shape
    Tk = ki_ref.shape[1]

    qi = qi_ref[...]                                        # bf16 integer values
    ki = ki_ref[...]
    vi = vi_ref[...]
    s_q = sq_ref[...].reshape(1, tq, 1)
    s_k_row = sk_ref[...].reshape(1, 1, Tk)
    s_v_col = sv_ref[...].reshape(1, Tk, 1)

    # head-independent score scale with 1/sqrt(d_k) folded in (hoisted out of the loop)
    s_qk = (s_q * (1.0 / math.sqrt(d_k))) * s_k_row         # (1, tq, Tk)

    # Pass 1: per-head (m, 1/Z) of shape (B, tq, 1).  Since m is the row max,
    # max_k softmax(s)[q, :] == 1/Z[q], so quantizer_3's abs-max over (batch, head,
    # key) is just the max over batch/head of 1/Z -- no (B, tq, Tk) probabilities
    # need to stay live across heads.
    ms, inv_zs = [], []
    p_amax = None
    for i in range(h):
        sl = slice(i * d_k, (i + 1) * d_k)
        s_int = jnp.einsum('bqd,bkd->bqk', qi[:, :, sl], ki[:, :, sl],
                           preferred_element_type=jnp.float32)       # exact integers
        scores = s_int * s_qk
        m = jnp.max(scores, axis=-1, keepdims=True)
        z = jnp.sum(jnp.exp(scores - m), axis=-1, keepdims=True)
        inv_z = 1.0 / z                                               # tiny reciprocal
        ms.append(m)
        inv_zs.append(inv_z)
        hm = jnp.max(inv_z, axis=0, keepdims=True)                    # (1, tq, 1)
        p_amax = hm if p_amax is None else jnp.maximum(p_amax, hm)

    s_p = jnp.where(p_amax > 0.0, p_amax / QMAX, 1.0)                 # quantizer_3 scale
    inv_sp = 1.0 / s_p

    # Pass 2: recompute the cheap bf16 QK matmul + exp per head, integer-quantize
    # p (s_p factored OUT of the PV matmul), and do the PV matmul as a hi/lo bf16
    # split so the MXU never sees an f32 operand.
    outs = []
    for i in range(h):
        sl = slice(i * d_k, (i + 1) * d_k)
        s_int = jnp.einsum('bqd,bkd->bqk', qi[:, :, sl], ki[:, :, sl],
                           preferred_element_type=jnp.float32)
        scores = s_int * s_qk
        e = jnp.exp(scores - ms[i])
        p_scale = inv_zs[i] * inv_sp                                  # (B, tq, 1)
        p_int = jnp.clip(jnp.round(e * p_scale), QMIN, QMAX).astype(jnp.bfloat16)
        # dequantized value (quantizer_4), per head slice -- never a full f32 copy.
        v_fq = vi[:, :, sl].astype(jnp.float32) * s_v_col
        v_hi = v_fq.astype(jnp.bfloat16)
        v_lo = (v_fq - v_hi.astype(jnp.float32)).astype(jnp.bfloat16)
        acc = jnp.einsum('bqk,bkd->bqd', p_int, v_hi,
                         preferred_element_type=jnp.float32)
        acc = acc + jnp.einsum('bqk,bkd->bqd', p_int, v_lo,
                               preferred_element_type=jnp.float32)
        outs.append(acc)
    # single lane-dense store; s_p applied once on the assembled (B, tq, D) output.
    o_ref[...] = jnp.concatenate(outs, axis=-1) * s_p


def quant_attention(qi, s_q, ki, s_k, vi, s_v, *, h, d_k):
    B, T, D = qi.shape
    tq = _pick_tile(T, _token_tile_cap(), 8)
    grid = (T // tq,)
    return pl.pallas_call(
        functools.partial(_attention_kernel, h=h, d_k=d_k),
        out_shape=jax.ShapeDtypeStruct((B, T, D), jnp.float32),
        grid=grid,
        in_specs=[pl.BlockSpec((B, tq, D), lambda i: (0, i, 0)),
                  pl.BlockSpec((tq, 1), lambda i: (i, 0)),
                  pl.BlockSpec((B, T, D), lambda i: (0, 0, 0)),
                  pl.BlockSpec((T, 1), lambda i: (0, 0)),
                  pl.BlockSpec((B, T, D), lambda i: (0, 0, 0)),
                  pl.BlockSpec((T, 1), lambda i: (0, 0))],
        out_specs=pl.BlockSpec((B, tq, D), lambda i: (0, i, 0)),
        compiler_params=pltpu.CompilerParams(
            dimension_semantics=("parallel",),
            vmem_limit_bytes=_vmem_budget()),
    )(qi, s_q, ki, s_k, vi, s_v)


# ---------------------------------------------------------------------------
# Full forward (glue: weight pre-quantization only; no activation transposes)
# ---------------------------------------------------------------------------
def multi_headed_attention(query, key, value, wq, wk, wv, wo, *, h):
    B, T, D = query.shape
    assert D % h == 0
    d_k = D // h
    # weight fake-quant hoisted out of the kernels (weights are static per call).
    (wq_i, s_wq), (wk_i, s_wk), (wv_i, s_wv), (wo_i, s_wo) = map(
        _quantize_weight, (wq, wk, wv, wo))

    # quantizer_query/key/value (per-token), then Q/K/V projections.
    (qi0, ki0, vi0), (sq0, sk0, sv0) = quant_tokens((query, key, value))
    q, k, v = quant_project((qi0, ki0, vi0), (sq0, sk0, sv0),
                            (wq_i, wk_i, wv_i), (s_wq, s_wk, s_wv))

    # quantizer_1/2/4 (per-token over batch + head + d_k), hoisted out of the
    # query-tile grid; attention consumes bf16 integer Q/K/V directly.
    (qi, ki, vi), (s_q, s_k, s_v) = quant_tokens((q, k, v))
    x = quant_attention(qi, s_q, ki, s_k, vi, s_v, h=h, d_k=d_k)   # (B, T, D)

    # quantizer_output + final projection.
    (xi,), (s_x,) = quant_tokens((x,))
    (out,) = quant_project((xi,), (s_x,), (wo_i,), (s_wo,))
    return out


# ---------------------------------------------------------------------------
# Pure-JAX reference (same factored-scale math, no Pallas) for a sanity check.
# Algebraically identical to the module's quantize->matmul order; written in the
# factored form so the comparison against the kernel is tight.
# ---------------------------------------------------------------------------
def reference_mha(query, key, value, wq, wk, wv, wo, *, h):
    B, T, D = query.shape
    d_k = D // h
    hp = jax.lax.Precision.HIGHEST

    def wquant(w):
        a = jnp.max(jnp.abs(w), axis=0, keepdims=True)
        s = jnp.where(a > 0.0, a / QMAX, 1.0)
        return jnp.clip(jnp.round(w / s), QMIN, QMAX), s

    def tquant(x):
        a = jnp.max(jnp.abs(x), axis=(0, 2), keepdims=True)
        s = jnp.where(a > 0.0, a / QMAX, 1.0)
        xi = jnp.clip(jnp.round(x * (1.0 / s)), QMIN, QMAX)
        return xi, s

    def proj(x, w):
        wi, sw = wquant(w)
        xi, sx = tquant(x)
        y = jnp.einsum('btd,de->bte', xi, wi, precision=hp)
        return y * (sx * sw[None])

    q, k, v = proj(query, wq), proj(key, wk), proj(value, wv)
    qi, s_q = tquant(q)
    ki, s_k = tquant(k)
    vi, s_v = tquant(v)

    s_qk = (s_q * (1.0 / math.sqrt(d_k))) * s_k.reshape(1, 1, T)

    ms, inv_zs = [], []
    p_amax = None
    for i in range(h):
        sl = slice(i * d_k, (i + 1) * d_k)
        s_int = jnp.einsum('bqd,bkd->bqk', qi[:, :, sl], ki[:, :, sl], precision=hp)
        scores = s_int * s_qk
        m = jnp.max(scores, axis=-1, keepdims=True)
        z = jnp.sum(jnp.exp(scores - m), axis=-1, keepdims=True)
        inv_z = 1.0 / z
        ms.append(m)
        inv_zs.append(inv_z)
        hm = jnp.max(inv_z, axis=0, keepdims=True)
        p_amax = hm if p_amax is None else jnp.maximum(p_amax, hm)
    s_p = jnp.where(p_amax > 0.0, p_amax / QMAX, 1.0)
    inv_sp = 1.0 / s_p

    outs = []
    for i in range(h):
        sl = slice(i * d_k, (i + 1) * d_k)
        s_int = jnp.einsum('bqd,bkd->bqk', qi[:, :, sl], ki[:, :, sl], precision=hp)
        scores = s_int * s_qk
        e = jnp.exp(scores - ms[i])
        p_int = jnp.clip(jnp.round(e * (inv_zs[i] * inv_sp)), QMIN, QMAX)
        v_fq = vi[:, :, sl] * s_v
        v_hi = v_fq.astype(jnp.bfloat16).astype(jnp.float32)
        v_lo = (v_fq - v_hi).astype(jnp.bfloat16).astype(jnp.float32)
        acc = (jnp.einsum('bqk,bkd->bqd', p_int, v_hi, precision=hp)
               + jnp.einsum('bqk,bkd->bqd', p_int, v_lo, precision=hp))
        outs.append(acc)
    x = jnp.concatenate(outs, axis=-1) * s_p
    return proj(x, wo)


if __name__ == "__main__":
    B, T, D, H = 2, 8, 32, 4           # batch, num_tokens, d_model, heads (d_k = 8)
    key0 = jax.random.PRNGKey(0)
    kq, kk, kv, kwq, kwk, kwv, kwo = jax.random.split(key0, 7)
    query = jax.random.normal(kq, (B, T, D), jnp.float32)
    key_in = jax.random.normal(kk, (B, T, D), jnp.float32)
    value = jax.random.normal(kv, (B, T, D), jnp.float32)
    wq = jax.random.normal(kwq, (D, D), jnp.float32)
    wk = jax.random.normal(kwk, (D, D), jnp.float32)
    wv = jax.random.normal(kwv, (D, D), jnp.float32)
    wo = jax.random.normal(kwo, (D, D), jnp.float32)

    mha = jax.jit(functools.partial(multi_headed_attention, h=H))
    out = jax.block_until_ready(mha(query, key_in, value, wq, wk, wv, wo))
    assert out.shape == (B, T, D)

    ref = reference_mha(query, key_in, value, wq, wk, wv, wo, h=H)
    max_diff = float(jnp.max(jnp.abs(out - ref)))
    scale = float(jnp.max(jnp.abs(ref)))
    # tolerance scaled to the output magnitude (quantized network; a single int8
    # rounding-boundary flip perturbs an element by far less than 2% of the range).
    assert max_diff <= 2e-2 * scale + 1e-3, f"max diff {max_diff} vs scale {scale}"
    print("KERNEL_OK")
</pallas_src>

<mosaic_0001>
module attributes {stable_mosaic.version = 11 : i64} {
  func.func @_token_quant_kernel(%arg0: i32, %arg1: memref<2x8x32xf32, #tpu.memory_space<vmem>>, %arg2: memref<2x8x32xf32, #tpu.memory_space<vmem>>, %arg3: memref<2x8x32xf32, #tpu.memory_space<vmem>>, %arg4: memref<2x8x32xbf16, #tpu.memory_space<vmem>>, %arg5: memref<2x8x32xbf16, #tpu.memory_space<vmem>>, %arg6: memref<2x8x32xbf16, #tpu.memory_space<vmem>>, %arg7: memref<8x1xf32, #tpu.memory_space<vmem>>, %arg8: memref<8x1xf32, #tpu.memory_space<vmem>>, %arg9: memref<8x1xf32, #tpu.memory_space<vmem>>) attributes {dimension_semantics = [#tpu.dimension_semantics<parallel>], iteration_bounds = array<i64: 1>, scalar_prefetch = 0 : i64, scratch_operands = 0 : i64, tpu.core_type = #tpu.core_type<tc>, window_params = [{transform_indices = @transform_0, window_bounds = array<i64: 2, 8, 32>}, {transform_indices = @transform_1, window_bounds = array<i64: 2, 8, 32>}, {transform_indices = @transform_2, window_bounds = array<i64: 2, 8, 32>}, {transform_indices = @transform_3, window_bounds = array<i64: 2, 8, 32>}, {transform_indices = @transform_4, window_bounds = array<i64: 2, 8, 32>}, {transform_indices = @transform_5, window_bounds = array<i64: 2, 8, 32>}, {transform_indices = @transform_6, window_bounds = array<i64: 8, 1>}, {transform_indices = @transform_7, window_bounds = array<i64: 8, 1>}, {transform_indices = @transform_8, window_bounds = array<i64: 8, 1>}]} {
    %c0 = arith.constant 0 : index
    %c0_0 = arith.constant 0 : index
    %c0_1 = arith.constant 0 : index
    %0 = vector.load %arg1[%c0, %c0_0, %c0_1] : memref<2x8x32xf32, #tpu.memory_space<vmem>>, vector<2x8x32xf32>
    %1 = math.absf %0 : vector<2x8x32xf32>
    %cst = arith.constant dense<0xFF800000> : vector<8xf32>
    %2 = vector.multi_reduction <maximumf>, %1, %cst [0, 2] : vector<2x8x32xf32> to vector<8xf32>
    %3 = vector.shape_cast %2 : vector<8xf32> to vector<1x8x1xf32>
    %cst_2 = arith.constant 0.000000e+00 : f32
    %4 = vector.broadcast %cst_2 : f32 to vector<1x8x1xf32>
    %5 = arith.cmpf ogt, %3, %4 : vector<1x8x1xf32>
    %cst_3 = arith.constant 1.270000e+02 : f32
    %6 = vector.broadcast %cst_3 : f32 to vector<1x8x1xf32>
    %7 = arith.divf %3, %6 : vector<1x8x1xf32>
    %cst_4 = arith.constant 1.000000e+00 : f32
    %8 = vector.broadcast %cst_4 : f32 to vector<1x8x1xf32>
    %9 = arith.select %5, %7, %8 : vector<1x8x1xi1>, vector<1x8x1xf32>
    %cst_5 = arith.constant 1.000000e+00 : f32
    %10 = vector.broadcast %cst_5 : f32 to vector<1x8x1xf32>
    %11 = arith.divf %10, %9 : vector<1x8x1xf32>
    %12 = vector.broadcast %11 : vector<1x8x1xf32> to vector<2x8x32xf32>
    %13 = arith.mulf %0, %12 : vector<2x8x32xf32>
    %14 = math.roundeven %13 : vector<2x8x32xf32>
    %cst_6 = arith.constant -1.280000e+02 : f32
    %cst_7 = arith.constant 1.270000e+02 : f32
    %15 = vector.broadcast %cst_6 : f32 to vector<2x8x32xf32>
    %16 = arith.maximumf %15, %14 : vector<2x8x32xf32>
    %17 = vector.broadcast %cst_7 : f32 to vector<2x8x32xf32>
    %18 = arith.minimumf %17, %16 : vector<2x8x32xf32>
    %19 = arith.truncf %18 : vector<2x8x32xf32> to vector<2x8x32xbf16>
    %c0_8 = arith.constant 0 : index
    %c0_9 = arith.constant 0 : index
    %c0_10 = arith.constant 0 : index
    %20 = vector.load %arg4[%c0_8, %c0_9, %c0_10] : memref<2x8x32xbf16, #tpu.memory_space<vmem>>, vector<2x8x32xbf16>
    tpu.vector_store %arg4[%c0_8, %c0_9, %c0_10], %19 {strides = array<i32>} : memref<2x8x32xbf16, #tpu.memory_space<vmem>>, vector<2x8x32xbf16>,
    %21 = vector.shape_cast %9 : vector<1x8x1xf32> to vector<8x1xf32>
    %c0_11 = arith.constant 0 : index
    %c0_12 = arith.constant 0 : index
    %22 = vector.load %arg7[%c0_11, %c0_12] : memref<8x1xf32, #tpu.memory_space<vmem>>, vector<8x1xf32>
    tpu.vector_store %arg7[%c0_11, %c0_12], %21 {strides = array<i32>} : memref<8x1xf32, #tpu.memory_space<vmem>>, vector<8x1xf32>,
    %c0_13 = arith.constant 0 : index
    %c0_14 = arith.constant 0 : index
    %c0_15 = arith.constant 0 : index
    %23 = vector.load %arg2[%c0_13, %c0_14, %c0_15] : memref<2x8x32xf32, #tpu.memory_space<vmem>>, vector<2x8x32xf32>
    %24 = math.absf %23 : vector<2x8x32xf32>
    %cst_16 = arith.constant dense<0xFF800000> : vector<8xf32>
    %25 = vector.multi_reduction <maximumf>, %24, %cst_16 [0, 2] : vector<2x8x32xf32> to vector<8xf32>
    %26 = vector.shape_cast %25 : vector<8xf32> to vector<1x8x1xf32>
    %cst_17 = arith.constant 0.000000e+00 : f32
    %27 = vector.broadcast %cst_17 : f32 to vector<1x8x1xf32>
    %28 = arith.cmpf ogt, %26, %27 : vector<1x8x1xf32>
    %cst_18 = arith.constant 1.270000e+02 : f32
    %29 = vector.broadcast %cst_18 : f32 to vector<1x8x1xf32>
    %30 = arith.divf %26, %29 : vector<1x8x1xf32>
    %cst_19 = arith.constant 1.000000e+00 : f32
    %31 = vector.broadcast %cst_19 : f32 to vector<1x8x1xf32>
    %32 = arith.select %28, %30, %31 : vector<1x8x1xi1>, vector<1x8x1xf32>
    %cst_20 = arith.constant 1.000000e+00 : f32
    %33 = vector.broadcast %cst_20 : f32 to vector<1x8x1xf32>
    %34 = arith.divf %33, %32 : vector<1x8x1xf32>
    %35 = vector.broadcast %34 : vector<1x8x1xf32> to vector<2x8x32xf32>
    %36 = arith.mulf %23, %35 : vector<2x8x32xf32>
    %37 = math.roundeven %36 : vector<2x8x32xf32>
    %cst_21 = arith.constant -1.280000e+02 : f32
    %cst_22 = arith.constant 1.270000e+02 : f32
    %38 = vector.broadcast %cst_21 : f32 to vector<2x8x32xf32>
    %39 = arith.maximumf %38, %37 : vector<2x8x32xf32>
    %40 = vector.broadcast %cst_22 : f32 to vector<2x8x32xf32>
    %41 = arith.minimumf %40, %39 : vector<2x8x32xf32>
    %42 = arith.truncf %41 : vector<2x8x32xf32> to vector<2x8x32xbf16>
    %c0_23 = arith.constant 0 : index
    %c0_24 = arith.constant 0 : index
    %c0_25 = arith.constant 0 : index
    %43 = vector.load %arg5[%c0_23, %c0_24, %c0_25] : memref<2x8x32xbf16, #tpu.memory_space<vmem>>, vector<2x8x32xbf16>
    tpu.vector_store %arg5[%c0_23, %c0_24, %c0_25], %42 {strides = array<i32>} : memref<2x8x32xbf16, #tpu.memory_space<vmem>>, vector<2x8x32xbf16>,
    %44 = vector.shape_cast %32 : vector<1x8x1xf32> to vector<8x1xf32>
    %c0_26 = arith.constant 0 : index
    %c0_27 = arith.constant 0 : index
    %45 = vector.load %arg8[%c0_26, %c0_27] : memref<8x1xf32, #tpu.memory_space<vmem>>, vector<8x1xf32>
    tpu.vector_store %arg8[%c0_26, %c0_27], %44 {strides = array<i32>} : memref<8x1xf32, #tpu.memory_space<vmem>>, vector<8x1xf32>,
    %c0_28 = arith.constant 0 : index
    %c0_29 = arith.constant 0 : index
    %c0_30 = arith.constant 0 : index
    %46 = vector.load %arg3[%c0_28, %c0_29, %c0_30] : memref<2x8x32xf32, #tpu.memory_space<vmem>>, vector<2x8x32xf32>
    %47 = math.absf %46 : vector<2x8x32xf32>
    %cst_31 = arith.constant dense<0xFF800000> : vector<8xf32>
    %48 = vector.multi_reduction <maximumf>, %47, %cst_31 [0, 2] : vector<2x8x32xf32> to vector<8xf32>
    %49 = vector.shape_cast %48 : vector<8xf32> to vector<1x8x1xf32>
    %cst_32 = arith.constant 0.000000e+00 : f32
    %50 = vector.broadcast %cst_32 : f32 to vector<1x8x1xf32>
    %51 = arith.cmpf ogt, %49, %50 : vector<1x8x1xf32>
    %cst_33 = arith.constant 1.270000e+02 : f32
    %52 = vector.broadcast %cst_33 : f32 to vector<1x8x1xf32>
    %53 = arith.divf %49, %52 : vector<1x8x1xf32>
    %cst_34 = arith.constant 1.000000e+00 : f32
    %54 = vector.broadcast %cst_34 : f32 to vector<1x8x1xf32>
    %55 = arith.select %51, %53, %54 : vector<1x8x1xi1>, vector<1x8x1xf32>
    %cst_35 = arith.constant 1.000000e+00 : f32
    %56 = vector.broadcast %cst_35 : f32 to vector<1x8x1xf32>
    %57 = arith.divf %56, %55 : vector<1x8x1xf32>
    %58 = vector.broadcast %57 : vector<1x8x1xf32> to vector<2x8x32xf32>
    %59 = arith.mulf %46, %58 : vector<2x8x32xf32>
    %60 = math.roundeven %59 : vector<2x8x32xf32>
    %cst_36 = arith.constant -1.280000e+02 : f32
    %cst_37 = arith.constant 1.270000e+02 : f32
    %61 = vector.broadcast %cst_36 : f32 to vector<2x8x32xf32>
    %62 = arith.maximumf %61, %60 : vector<2x8x32xf32>
    %63 = vector.broadcast %cst_37 : f32 to vector<2x8x32xf32>
    %64 = arith.minimumf %63, %62 : vector<2x8x32xf32>
    %65 = arith.truncf %64 : vector<2x8x32xf32> to vector<2x8x32xbf16>
    %c0_38 = arith.constant 0 : index
    %c0_39 = arith.constant 0 : index
    %c0_40 = arith.constant 0 : index
    %66 = vector.load %arg6[%c0_38, %c0_39, %c0_40] : memref<2x8x32xbf16, #tpu.memory_space<vmem>>, vector<2x8x32xbf16>
    tpu.vector_store %arg6[%c0_38, %c0_39, %c0_40], %65 {strides = array<i32>} : memref<2x8x32xbf16, #tpu.memory_space<vmem>>, vector<2x8x32xbf16>,
    %67 = vector.shape_cast %55 : vector<1x8x1xf32> to vector<8x1xf32>
    %c0_41 = arith.constant 0 : index
    %c0_42 = arith.constant 0 : index
    %68 = vector.load %arg9[%c0_41, %c0_42] : memref<8x1xf32, #tpu.memory_space<vmem>>, vector<8x1xf32>
    tpu.vector_store %arg9[%c0_41, %c0_42], %67 {strides = array<i32>} : memref<8x1xf32, #tpu.memory_space<vmem>>, vector<8x1xf32>,
    return
  }
  func.func @transform_0(%arg0: i32) -> (i32, i32, i32) {
    %c0_i32 = arith.constant 0 : i32
    %c0_i32_0 = arith.constant 0 : i32
    %c0_i32_1 = arith.constant 0 : i32
    return %c0_i32, %arg0, %c0_i32_0 : i32, i32, i32
  }
  func.func @transform_1(%arg0: i32) -> (i32, i32, i32) {
    %c0_i32 = arith.constant 0 : i32
    %c0_i32_0 = arith.constant 0 : i32
    %c0_i32_1 = arith.constant 0 : i32
    return %c0_i32, %arg0, %c0_i32_0 : i32, i32, i32
  }
  func.func @transform_2(%arg0: i32) -> (i32, i32, i32) {
    %c0_i32 = arith.constant 0 : i32
    %c0_i32_0 = arith.constant 0 : i32
    %c0_i32_1 = arith.constant 0 : i32
    return %c0_i32, %arg0, %c0_i32_0 : i32, i32, i32
  }
  func.func @transform_3(%arg0: i32) -> (i32, i32, i32) {
    %c0_i32 = arith.constant 0 : i32
    %c0_i32_0 = arith.constant 0 : i32
    %c0_i32_1 = arith.constant 0 : i32
    return %c0_i32, %arg0, %c0_i32_0 : i32, i32, i32
  }
  func.func @transform_4(%arg0: i32) -> (i32, i32, i32) {
    %c0_i32 = arith.constant 0 : i32
    %c0_i32_0 = arith.constant 0 : i32
    %c0_i32_1 = arith.constant 0 : i32
    return %c0_i32, %arg0, %c0_i32_0 : i32, i32, i32
  }
  func.func @transform_5(%arg0: i32) -> (i32, i32, i32) {
    %c0_i32 = arith.constant 0 : i32
    %c0_i32_0 = arith.constant 0 : i32
    %c0_i32_1 = arith.constant 0 : i32
    return %c0_i32, %arg0, %c0_i32_0 : i32, i32, i32
  }
  func.func @transform_6(%arg0: i32) -> (i32, i32) {
    %c0_i32 = arith.constant 0 : i32
    %c0_i32_0 = arith.constant 0 : i32
    return %arg0, %c0_i32 : i32, i32
  }
  func.func @transform_7(%arg0: i32) -> (i32, i32) {
    %c0_i32 = arith.constant 0 : i32
    %c0_i32_0 = arith.constant 0 : i32
    return %arg0, %c0_i32 : i32, i32
  }
  func.func @transform_8(%arg0: i32) -> (i32, i32) {
    %c0_i32 = arith.constant 0 : i32
    %c0_i32_0 = arith.constant 0 : i32
    return %arg0, %c0_i32 : i32, i32
  }
}

module attributes {stable_mosaic.version = 11 : i64} {
  func.func @_proj_kernel(%arg0: i32, %arg1: i32, %arg2: memref<2x8x32xbf16, #tpu.memory_space<vmem>>, %arg3: memref<2x8x32xbf16, #tpu.memory_space<vmem>>, %arg4: memref<2x8x32xbf16, #tpu.memory_space<vmem>>, %arg5: memref<8x1xf32, #tpu.memory_space<vmem>>, %arg6: memref<8x1xf32, #tpu.memory_space<vmem>>, %arg7: memref<8x1xf32, #tpu.memory_space<vmem>>, %arg8: memref<32x32xbf16, #tpu.memory_space<vmem>>, %arg9: memref<32x32xbf16, #tpu.memory_space<vmem>>, %arg10: memref<32x32xbf16, #tpu.memory_space<vmem>>, %arg11: memref<1x32xf32, #tpu.memory_space<vmem>>, %arg12: memref<1x32xf32, #tpu.memory_space<vmem>>, %arg13: memref<1x32xf32, #tpu.memory_space<vmem>>, %arg14: memref<2x8x32xf32, #tpu.memory_space<vmem>>, %arg15: memref<2x8x32xf32, #tpu.memory_space<vmem>>, %arg16: memref<2x8x32xf32, #tpu.memory_space<vmem>>) attributes {dimension_semantics = [#tpu.dimension_semantics<parallel>, #tpu.dimension_semantics<parallel>], iteration_bounds = array<i64: 1, 1>, scalar_prefetch = 0 : i64, scratch_operands = 0 : i64, tpu.core_type = #tpu.core_type<tc>, window_params = [{transform_indices = @transform_0, window_bounds = array<i64: 2, 8, 32>}, {transform_indices = @transform_1, window_bounds = array<i64: 2, 8, 32>}, {transform_indices = @transform_2, window_bounds = array<i64: 2, 8, 32>}, {transform_indices = @transform_3, window_bounds = array<i64: 8, 1>}, {transform_indices = @transform_4, window_bounds = array<i64: 8, 1>}, {transform_indices = @transform_5, window_bounds = array<i64: 8, 1>}, {transform_indices = @transform_6, window_bounds = array<i64: 32, 32>}, {transform_indices = @transform_7, window_bounds = array<i64: 32, 32>}, {transform_indices = @transform_8, window_bounds = array<i64: 32, 32>}, {transform_indices = @transform_9, window_bounds = array<i64: 1, 32>}, {transform_indices = @transform_10, window_bounds = array<i64: 1, 32>}, {transform_indices = @transform_11, window_bounds = array<i64: 1, 32>}, {transform_indices = @transform_12, window_bounds = array<i64: 2, 8, 32>}, {transform_indices = @transform_13, window_bounds = array<i64: 2, 8, 32>}, {transform_indices = @transform_14, window_bounds = array<i64: 2, 8, 32>}]} {
    %c0 = arith.constant 0 : index
    %c0_0 = arith.constant 0 : index
    %c0_1 = arith.constant 0 : index
    %0 = vector.load %arg2[%c0, %c0_0, %c0_1] : memref<2x8x32xbf16, #tpu.memory_space<vmem>>, vector<2x8x32xbf16>
    %1 = vector.shape_cast %0 : vector<2x8x32xbf16> to vector<16x32xbf16>
    %c0_2 = arith.constant 0 : index
    %c0_3 = arith.constant 0 : index
    %2 = vector.load %arg8[%c0_2, %c0_3] : memref<32x32xbf16, #tpu.memory_space<vmem>>, vector<32x32xbf16>
    %cst = arith.constant dense<0.000000e+00> : vector<16x32xf32>
    %3 = tpu.matmul %1, %2, %cst {dimension_numbers = #tpu.dot_dimension_numbers<[1], [0], [0], [1], [0, 0, 1, 1], [], []>} : vector<16x32xbf16>, vector<32x32xbf16>, vector<16x32xf32> -> vector<16x32xf32>
    %4 = vector.shape_cast %3 : vector<16x32xf32> to vector<2x8x32xf32>
    %c0_4 = arith.constant 0 : index
    %c0_5 = arith.constant 0 : index
    %5 = vector.load %arg5[%c0_4, %c0_5] : memref<8x1xf32, #tpu.memory_space<vmem>>, vector<8x1xf32>
    %6 = vector.shape_cast %5 : vector<8x1xf32> to vector<1x8x1xf32>
    %c0_6 = arith.constant 0 : index
    %c0_7 = arith.constant 0 : index
    %7 = vector.load %arg11[%c0_6, %c0_7] : memref<1x32xf32, #tpu.memory_space<vmem>>, vector<1x32xf32>
    %8 = vector.shape_cast %7 : vector<1x32xf32> to vector<1x1x32xf32>
    %9 = vector.broadcast %6 : vector<1x8x1xf32> to vector<1x8x32xf32>
    %10 = vector.broadcast %8 : vector<1x1x32xf32> to vector<1x8x32xf32>
    %11 = arith.mulf %9, %10 : vector<1x8x32xf32>
    %12 = vector.broadcast %11 : vector<1x8x32xf32> to vector<2x8x32xf32>
    %13 = arith.mulf %4, %12 : vector<2x8x32xf32>
    %c0_8 = arith.constant 0 : index
    %c0_9 = arith.constant 0 : index
    %c0_10 = arith.constant 0 : index
    %14 = vector.load %arg14[%c0_8, %c0_9, %c0_10] : memref<2x8x32xf32, #tpu.memory_space<vmem>>, vector<2x8x32xf32>
    tpu.vector_store %arg14[%c0_8, %c0_9, %c0_10], %13 {strides = array<i32>} : memref<2x8x32xf32, #tpu.memory_space<vmem>>, vector<2x8x32xf32>,
    %c0_11 = arith.constant 0 : index
    %c0_12 = arith.constant 0 : index
    %c0_13 = arith.constant 0 : index
    %15 = vector.load %arg3[%c0_11, %c0_12, %c0_13] : memref<2x8x32xbf16, #tpu.memory_space<vmem>>, vector<2x8x32xbf16>
    %16 = vector.shape_cast %15 : vector<2x8x32xbf16> to vector<16x32xbf16>
    %c0_14 = arith.constant 0 : index
    %c0_15 = arith.constant 0 : index
    %17 = vector.load %arg9[%c0_14, %c0_15] : memref<32x32xbf16, #tpu.memory_space<vmem>>, vector<32x32xbf16>
    %cst_16 = arith.constant dense<0.000000e+00> : vector<16x32xf32>
    %18 = tpu.matmul %16, %17, %cst_16 {dimension_numbers = #tpu.dot_dimension_numbers<[1], [0], [0], [1], [0, 0, 1, 1], [], []>} : vector<16x32xbf16>, vector<32x32xbf16>, vector<16x32xf32> -> vector<16x32xf32>
    %19 = vector.shape_cast %18 : vector<16x32xf32> to vector<2x8x32xf32>
    %c0_17 = arith.constant 0 : index
    %c0_18 = arith.constant 0 : index
    %20 = vector.load %arg6[%c0_17, %c0_18] : memref<8x1xf32, #tpu.memory_space<vmem>>, vector<8x1xf32>
    %21 = vector.shape_cast %20 : vector<8x1xf32> to vector<1x8x1xf32>
    %c0_19 = arith.constant 0 : index
    %c0_20 = arith.constant 0 : index
    %22 = vector.load %arg12[%c0_19, %c0_20] : memref<1x32xf32, #tpu.memory_space<vmem>>, vector<1x32xf32>
    %23 = vector.shape_cast %22 : vector<1x32xf32> to vector<1x1x32xf32>
    %24 = vector.broadcast %21 : vector<1x8x1xf32> to vector<1x8x32xf32>
    %25 = vector.broadcast %23 : vector<1x1x32xf32> to vector<1x8x32xf32>
    %26 = arith.mulf %24, %25 : vector<1x8x32xf32>
    %27 = vector.broadcast %26 : vector<1x8x32xf32> to vector<2x8x32xf32>
    %28 = arith.mulf %19, %27 : vector<2x8x32xf32>
    %c0_21 = arith.constant 0 : index
    %c0_22 = arith.constant 0 : index
    %c0_23 = arith.constant 0 : index
    %29 = vector.load %arg15[%c0_21, %c0_22, %c0_23] : memref<2x8x32xf32, #tpu.memory_space<vmem>>, vector<2x8x32xf32>
    tpu.vector_store %arg15[%c0_21, %c0_22, %c0_23], %28 {strides = array<i32>} : memref<2x8x32xf32, #tpu.memory_space<vmem>>, vector<2x8x32xf32>,
    %c0_24 = arith.constant 0 : index
    %c0_25 = arith.constant 0 : index
    %c0_26 = arith.constant 0 : index
    %30 = vector.load %arg4[%c0_24, %c0_25, %c0_26] : memref<2x8x32xbf16, #tpu.memory_space<vmem>>, vector<2x8x32xbf16>
    %31 = vector.shape_cast %30 : vector<2x8x32xbf16> to vector<16x32xbf16>
    %c0_27 = arith.constant 0 : index
    %c0_28 = arith.constant 0 : index
    %32 = vector.load %arg10[%c0_27, %c0_28] : memref<32x32xbf16, #tpu.memory_space<vmem>>, vector<32x32xbf16>
    %cst_29 = arith.constant dense<0.000000e+00> : vector<16x32xf32>
    %33 = tpu.matmul %31, %32, %cst_29 {dimension_numbers = #tpu.dot_dimension_numbers<[1], [0], [0], [1], [0, 0, 1, 1], [], []>} : vector<16x32xbf16>, vector<32x32xbf16>, vector<16x32xf32> -> vector<16x32xf32>
    %34 = vector.shape_cast %33 : vector<16x32xf32> to vector<2x8x32xf32>
    %c0_30 = arith.constant 0 : index
    %c0_31 = arith.constant 0 : index
    %35 = vector.load %arg7[%c0_30, %c0_31] : memref<8x1xf32, #tpu.memory_space<vmem>>, vector<8x1xf32>
    %36 = vector.shape_cast %35 : vector<8x1xf32> to vector<1x8x1xf32>
    %c0_32 = arith.constant 0 : index
    %c0_33 = arith.constant 0 : index
    %37 = vector.load %arg13[%c0_32, %c0_33] : memref<1x32xf32, #tpu.memory_space<vmem>>, vector<1x32xf32>
    %38 = vector.shape_cast %37 : vector<1x32xf32> to vector<1x1x32xf32>
    %39 = vector.broadcast %36 : vector<1x8x1xf32> to vector<1x8x32xf32>
    %40 = vector.broadcast %38 : vector<1x1x32xf32> to vector<1x8x32xf32>
    %41 = arith.mulf %39, %40 : vector<1x8x32xf32>
    %42 = vector.broadcast %41 : vector<1x8x32xf32> to vector<2x8x32xf32>
    %43 = arith.mulf %34, %42 : vector<2x8x32xf32>
    %c0_34 = arith.constant 0 : index
    %c0_35 = arith.constant 0 : index
    %c0_36 = arith.constant 0 : index
    %44 = vector.load %arg16[%c0_34, %c0_35, %c0_36] : memref<2x8x32xf32, #tpu.memory_space<vmem>>, vector<2x8x32xf32>
    tpu.vector_store %arg16[%c0_34, %c0_35, %c0_36], %43 {strides = array<i32>} : memref<2x8x32xf32, #tpu.memory_space<vmem>>, vector<2x8x32xf32>,
    return
  }
  func.func @transform_0(%arg0: i32, %arg1: i32) -> (i32, i32, i32) {
    %c0_i32 = arith.constant 0 : i32
    %c0_i32_0 = arith.constant 0 : i32
    %c0_i32_1 = arith.constant 0 : i32
    return %c0_i32, %arg0, %c0_i32_0 : i32, i32, i32
  }
  func.func @transform_1(%arg0: i32, %arg1: i32) -> (i32, i32, i32) {
    %c0_i32 = arith.constant 0 : i32
    %c0_i32_0 = arith.constant 0 : i32
    %c0_i32_1 = arith.constant 0 : i32
    return %c0_i32, %arg0, %c0_i32_0 : i32, i32, i32
  }
  func.func @transform_2(%arg0: i32, %arg1: i32) -> (i32, i32, i32) {
    %c0_i32 = arith.constant 0 : i32
    %c0_i32_0 = arith.constant 0 : i32
    %c0_i32_1 = arith.constant 0 : i32
    return %c0_i32, %arg0, %c0_i32_0 : i32, i32, i32
  }
  func.func @transform_3(%arg0: i32, %arg1: i32) -> (i32, i32) {
    %c0_i32 = arith.constant 0 : i32
    %c0_i32_0 = arith.constant 0 : i32
    return %arg0, %c0_i32 : i32, i32
  }
  func.func @transform_4(%arg0: i32, %arg1: i32) -> (i32, i32) {
    %c0_i32 = arith.constant 0 : i32
    %c0_i32_0 = arith.constant 0 : i32
    return %arg0, %c0_i32 : i32, i32
  }
  func.func @transform_5(%arg0: i32, %arg1: i32) -> (i32, i32) {
    %c0_i32 = arith.constant 0 : i32
    %c0_i32_0 = arith.constant 0 : i32
    return %arg0, %c0_i32 : i32, i32
  }
  func.func @transform_6(%arg0: i32, %arg1: i32) -> (i32, i32) {
    %c0_i32 = arith.constant 0 : i32
    %c0_i32_0 = arith.constant 0 : i32
    return %c0_i32, %arg1 : i32, i32
  }
  func.func @transform_7(%arg0: i32, %arg1: i32) -> (i32, i32) {
    %c0_i32 = arith.constant 0 : i32
    %c0_i32_0 = arith.constant 0 : i32
    return %c0_i32, %arg1 : i32, i32
  }
  func.func @transform_8(%arg0: i32, %arg1: i32) -> (i32, i32) {
    %c0_i32 = arith.constant 0 : i32
    %c0_i32_0 = arith.constant 0 : i32
    return %c0_i32, %arg1 : i32, i32
  }
  func.func @transform_9(%arg0: i32, %arg1: i32) -> (i32, i32) {
    %c0_i32 = arith.constant 0 : i32
    %c0_i32_0 = arith.constant 0 : i32
    return %c0_i32, %arg1 : i32, i32
  }
  func.func @transform_10(%arg0: i32, %arg1: i32) -> (i32, i32) {
    %c0_i32 = arith.constant 0 : i32
    %c0_i32_0 = arith.constant 0 : i32
    return %c0_i32, %arg1 : i32, i32
  }
  func.func @transform_11(%arg0: i32, %arg1: i32) -> (i32, i32) {
    %c0_i32 = arith.constant 0 : i32
    %c0_i32_0 = arith.constant 0 : i32
    return %c0_i32, %arg1 : i32, i32
  }
  func.func @transform_12(%arg0: i32, %arg1: i32) -> (i32, i32, i32) {
    %c0_i32 = arith.constant 0 : i32
    %c0_i32_0 = arith.constant 0 : i32
    return %c0_i32, %arg0, %arg1 : i32, i32, i32
  }
  func.func @transform_13(%arg0: i32, %arg1: i32) -> (i32, i32, i32) {
    %c0_i32 = arith.constant 0 : i32
    %c0_i32_0 = arith.constant 0 : i32
    return %c0_i32, %arg0, %arg1 : i32, i32, i32
  }
  func.func @transform_14(%arg0: i32, %arg1: i32) -> (i32, i32, i32) {
    %c0_i32 = arith.constant 0 : i32
    %c0_i32_0 = arith.constant 0 : i32
    return %c0_i32, %arg0, %arg1 : i32, i32, i32
  }
}

module attributes {stable_mosaic.version = 11 : i64} {
  func.func @_token_quant_kernel(%arg0: i32, %arg1: memref<2x8x32xf32, #tpu.memory_space<vmem>>, %arg2: memref<2x8x32xf32, #tpu.memory_space<vmem>>, %arg3: memref<2x8x32xf32, #tpu.memory_space<vmem>>, %arg4: memref<2x8x32xbf16, #tpu.memory_space<vmem>>, %arg5: memref<2x8x32xbf16, #tpu.memory_space<vmem>>, %arg6: memref<2x8x32xbf16, #tpu.memory_space<vmem>>, %arg7: memref<8x1xf32, #tpu.memory_space<vmem>>, %arg8: memref<8x1xf32, #tpu.memory_space<vmem>>, %arg9: memref<8x1xf32, #tpu.memory_space<vmem>>) attributes {dimension_semantics = [#tpu.dimension_semantics<parallel>], iteration_bounds = array<i64: 1>, scalar_prefetch = 0 : i64, scratch_operands = 0 : i64, tpu.core_type = #tpu.core_type<tc>, window_params = [{transform_indices = @transform_0, window_bounds = array<i64: 2, 8, 32>}, {transform_indices = @transform_1, window_bounds = array<i64: 2, 8, 32>}, {transform_indices = @transform_2, window_bounds = array<i64: 2, 8, 32>}, {transform_indices = @transform_3, window_bounds = array<i64: 2, 8, 32>}, {transform_indices = @transform_4, window_bounds = array<i64: 2, 8, 32>}, {transform_indices = @transform_5, window_bounds = array<i64: 2, 8, 32>}, {transform_indices = @transform_6, window_bounds = array<i64: 8, 1>}, {transform_indices = @transform_7, window_bounds = array<i64: 8, 1>}, {transform_indices = @transform_8, window_bounds = array<i64: 8, 1>}]} {
    %c0 = arith.constant 0 : index
    %c0_0 = arith.constant 0 : index
    %c0_1 = arith.constant 0 : index
    %0 = vector.load %arg1[%c0, %c0_0, %c0_1] : memref<2x8x32xf32, #tpu.memory_space<vmem>>, vector<2x8x32xf32>
    %1 = math.absf %0 : vector<2x8x32xf32>
    %cst = arith.constant dense<0xFF800000> : vector<8xf32>
    %2 = vector.multi_reduction <maximumf>, %1, %cst [0, 2] : vector<2x8x32xf32> to vector<8xf32>
    %3 = vector.shape_cast %2 : vector<8xf32> to vector<1x8x1xf32>
    %cst_2 = arith.constant 0.000000e+00 : f32
    %4 = vector.broadcast %cst_2 : f32 to vector<1x8x1xf32>
    %5 = arith.cmpf ogt, %3, %4 : vector<1x8x1xf32>
    %cst_3 = arith.constant 1.270000e+02 : f32
    %6 = vector.broadcast %cst_3 : f32 to vector<1x8x1xf32>
    %7 = arith.divf %3, %6 : vector<1x8x1xf32>
    %cst_4 = arith.constant 1.000000e+00 : f32
    %8 = vector.broadcast %cst_4 : f32 to vector<1x8x1xf32>
    %9 = arith.select %5, %7, %8 : vector<1x8x1xi1>, vector<1x8x1xf32>
    %cst_5 = arith.constant 1.000000e+00 : f32
    %10 = vector.broadcast %cst_5 : f32 to vector<1x8x1xf32>
    %11 = arith.divf %10, %9 : vector<1x8x1xf32>
    %12 = vector.broadcast %11 : vector<1x8x1xf32> to vector<2x8x32xf32>
    %13 = arith.mulf %0, %12 : vector<2x8x32xf32>
    %14 = math.roundeven %13 : vector<2x8x32xf32>
    %cst_6 = arith.constant -1.280000e+02 : f32
    %cst_7 = arith.constant 1.270000e+02 : f32
    %15 = vector.broadcast %cst_6 : f32 to vector<2x8x32xf32>
    %16 = arith.maximumf %15, %14 : vector<2x8x32xf32>
    %17 = vector.broadcast %cst_7 : f32 to vector<2x8x32xf32>
    %18 = arith.minimumf %17, %16 : vector<2x8x32xf32>
    %19 = arith.truncf %18 : vector<2x8x32xf32> to vector<2x8x32xbf16>
    %c0_8 = arith.constant 0 : index
    %c0_9 = arith.constant 0 : index
    %c0_10 = arith.constant 0 : index
    %20 = vector.load %arg4[%c0_8, %c0_9, %c0_10] : memref<2x8x32xbf16, #tpu.memory_space<vmem>>, vector<2x8x32xbf16>
    tpu.vector_store %arg4[%c0_8, %c0_9, %c0_10], %19 {strides = array<i32>} : memref<2x8x32xbf16, #tpu.memory_space<vmem>>, vector<2x8x32xbf16>,
    %21 = vector.shape_cast %9 : vector<1x8x1xf32> to vector<8x1xf32>
    %c0_11 = arith.constant 0 : index
    %c0_12 = arith.constant 0 : index
    %22 = vector.load %arg7[%c0_11, %c0_12] : memref<8x1xf32, #tpu.memory_space<vmem>>, vector<8x1xf32>
    tpu.vector_store %arg7[%c0_11, %c0_12], %21 {strides = array<i32>} : memref<8x1xf32, #tpu.memory_space<vmem>>, vector<8x1xf32>,
    %c0_13 = arith.constant 0 : index
    %c0_14 = arith.constant 0 : index
    %c0_15 = arith.constant 0 : index
    %23 = vector.load %arg2[%c0_13, %c0_14, %c0_15] : memref<2x8x32xf32, #tpu.memory_space<vmem>>, vector<2x8x32xf32>
    %24 = math.absf %23 : vector<2x8x32xf32>
    %cst_16 = arith.constant dense<0xFF800000> : vector<8xf32>
    %25 = vector.multi_reduction <maximumf>, %24, %cst_16 [0, 2] : vector<2x8x32xf32> to vector<8xf32>
    %26 = vector.shape_cast %25 : vector<8xf32> to vector<1x8x1xf32>
    %cst_17 = arith.constant 0.000000e+00 : f32
    %27 = vector.broadcast %cst_17 : f32 to vector<1x8x1xf32>
    %28 = arith.cmpf ogt, %26, %27 : vector<1x8x1xf32>
    %cst_18 = arith.constant 1.270000e+02 : f32
    %29 = vector.broadcast %cst_18 : f32 to vector<1x8x1xf32>
    %30 = arith.divf %26, %29 : vector<1x8x1xf32>
    %cst_19 = arith.constant 1.000000e+00 : f32
    %31 = vector.broadcast %cst_19 : f32 to vector<1x8x1xf32>
    %32 = arith.select %28, %30, %31 : vector<1x8x1xi1>, vector<1x8x1xf32>
    %cst_20 = arith.constant 1.000000e+00 : f32
    %33 = vector.broadcast %cst_20 : f32 to vector<1x8x1xf32>
    %34 = arith.divf %33, %32 : vector<1x8x1xf32>
    %35 = vector.broadcast %34 : vector<1x8x1xf32> to vector<2x8x32xf32>
    %36 = arith.mulf %23, %35 : vector<2x8x32xf32>
    %37 = math.roundeven %36 : vector<2x8x32xf32>
    %cst_21 = arith.constant -1.280000e+02 : f32
    %cst_22 = arith.constant 1.270000e+02 : f32
    %38 = vector.broadcast %cst_21 : f32 to vector<2x8x32xf32>
    %39 = arith.maximumf %38, %37 : vector<2x8x32xf32>
    %40 = vector.broadcast %cst_22 : f32 to vector<2x8x32xf32>
    %41 = arith.minimumf %40, %39 : vector<2x8x32xf32>
    %42 = arith.truncf %41 : vector<2x8x32xf32> to vector<2x8x32xbf16>
    %c0_23 = arith.constant 0 : index
    %c0_24 = arith.constant 0 : index
    %c0_25 = arith.constant 0 : index
    %43 = vector.load %arg5[%c0_23, %c0_24, %c0_25] : memref<2x8x32xbf16, #tpu.memory_space<vmem>>, vector<2x8x32xbf16>
    tpu.vector_store %arg5[%c0_23, %c0_24, %c0_25], %42 {strides = array<i32>} : memref<2x8x32xbf16, #tpu.memory_space<vmem>>, vector<2x8x32xbf16>,
    %44 = vector.shape_cast %32 : vector<1x8x1xf32> to vector<8x1xf32>
    %c0_26 = arith.constant 0 : index
    %c0_27 = arith.constant 0 : index
    %45 = vector.load %arg8[%c0_26, %c0_27] : memref<8x1xf32, #tpu.memory_space<vmem>>, vector<8x1xf32>
    tpu.vector_store %arg8[%c0_26, %c0_27], %44 {strides = array<i32>} : memref<8x1xf32, #tpu.memory_space<vmem>>, vector<8x1xf32>,
    %c0_28 = arith.constant 0 : index
    %c0_29 = arith.constant 0 : index
    %c0_30 = arith.constant 0 : index
    %46 = vector.load %arg3[%c0_28, %c0_29, %c0_30] : memref<2x8x32xf32, #tpu.memory_space<vmem>>, vector<2x8x32xf32>
    %47 = math.absf %46 : vector<2x8x32xf32>
    %cst_31 = arith.constant dense<0xFF800000> : vector<8xf32>
    %48 = vector.multi_reduction <maximumf>, %47, %cst_31 [0, 2] : vector<2x8x32xf32> to vector<8xf32>
    %49 = vector.shape_cast %48 : vector<8xf32> to vector<1x8x1xf32>
    %cst_32 = arith.constant 0.000000e+00 : f32
    %50 = vector.broadcast %cst_32 : f32 to vector<1x8x1xf32>
    %51 = arith.cmpf ogt, %49, %50 : vector<1x8x1xf32>
    %cst_33 = arith.constant 1.270000e+02 : f32
    %52 = vector.broadcast %cst_33 : f32 to vector<1x8x1xf32>
    %53 = arith.divf %49, %52 : vector<1x8x1xf32>
    %cst_34 = arith.constant 1.000000e+00 : f32
    %54 = vector.broadcast %cst_34 : f32 to vector<1x8x1xf32>
    %55 = arith.select %51, %53, %54 : vector<1x8x1xi1>, vector<1x8x1xf32>
    %cst_35 = arith.constant 1.000000e+00 : f32
    %56 = vector.broadcast %cst_35 : f32 to vector<1x8x1xf32>
    %57 = arith.divf %56, %55 : vector<1x8x1xf32>
    %58 = vector.broadcast %57 : vector<1x8x1xf32> to vector<2x8x32xf32>
    %59 = arith.mulf %46, %58 : vector<2x8x32xf32>
    %60 = math.roundeven %59 : vector<2x8x32xf32>
    %cst_36 = arith.constant -1.280000e+02 : f32
    %cst_37 = arith.constant 1.270000e+02 : f32
    %61 = vector.broadcast %cst_36 : f32 to vector<2x8x32xf32>
    %62 = arith.maximumf %61, %60 : vector<2x8x32xf32>
    %63 = vector.broadcast %cst_37 : f32 to vector<2x8x32xf32>
    %64 = arith.minimumf %63, %62 : vector<2x8x32xf32>
    %65 = arith.truncf %64 : vector<2x8x32xf32> to vector<2x8x32xbf16>
    %c0_38 = arith.constant 0 : index
    %c0_39 = arith.constant 0 : index
    %c0_40 = arith.constant 0 : index
    %66 = vector.load %arg6[%c0_38, %c0_39, %c0_40] : memref<2x8x32xbf16, #tpu.memory_space<vmem>>, vector<2x8x32xbf16>
    tpu.vector_store %arg6[%c0_38, %c0_39, %c0_40], %65 {strides = array<i32>} : memref<2x8x32xbf16, #tpu.memory_space<vmem>>, vector<2x8x32xbf16>,
    %67 = vector.shape_cast %55 : vector<1x8x1xf32> to vector<8x1xf32>
    %c0_41 = arith.constant 0 : index
    %c0_42 = arith.constant 0 : index
    %68 = vector.load %arg9[%c0_41, %c0_42] : memref<8x1xf32, #tpu.memory_space<vmem>>, vector<8x1xf32>
    tpu.vector_store %arg9[%c0_41, %c0_42], %67 {strides = array<i32>} : memref<8x1xf32, #tpu.memory_space<vmem>>, vector<8x1xf32>,
    return
  }
  func.func @transform_0(%arg0: i32) -> (i32, i32, i32) {
    %c0_i32 = arith.constant 0 : i32
    %c0_i32_0 = arith.constant 0 : i32
    %c0_i32_1 = arith.constant 0 : i32
    return %c0_i32, %arg0, %c0_i32_0 : i32, i32, i32
  }
  func.func @transform_1(%arg0: i32) -> (i32, i32, i32) {
    %c0_i32 = arith.constant 0 : i32
    %c0_i32_0 = arith.constant 0 : i32
    %c0_i32_1 = arith.constant 0 : i32
    return %c0_i32, %arg0, %c0_i32_0 : i32, i32, i32
  }
  func.func @transform_2(%arg0: i32) -> (i32, i32, i32) {
    %c0_i32 = arith.constant 0 : i32
    %c0_i32_0 = arith.constant 0 : i32
    %c0_i32_1 = arith.constant 0 : i32
    return %c0_i32, %arg0, %c0_i32_0 : i32, i32, i32
  }
  func.func @transform_3(%arg0: i32) -> (i32, i32, i32) {
    %c0_i32 = arith.constant 0 : i32
    %c0_i32_0 = arith.constant 0 : i32
    %c0_i32_1 = arith.constant 0 : i32
    return %c0_i32, %arg0, %c0_i32_0 : i32, i32, i32
  }
  func.func @transform_4(%arg0: i32) -> (i32, i32, i32) {
    %c0_i32 = arith.constant 0 : i32
    %c0_i32_0 = arith.constant 0 : i32
    %c0_i32_1 = arith.constant 0 : i32
    return %c0_i32, %arg0, %c0_i32_0 : i32, i32, i32
  }
  func.func @transform_5(%arg0: i32) -> (i32, i32, i32) {
    %c0_i32 = arith.constant 0 : i32
    %c0_i32_0 = arith.constant 0 : i32
    %c0_i32_1 = arith.constant 0 : i32
    return %c0_i32, %arg0, %c0_i32_0 : i32, i32, i32
  }
  func.func @transform_6(%arg0: i32) -> (i32, i32) {
    %c0_i32 = arith.constant 0 : i32
    %c0_i32_0 = arith.constant 0 : i32
    return %arg0, %c0_i32 : i32, i32
  }
  func.func @transform_7(%arg0: i32) -> (i32, i32) {
    %c0_i32 = arith.constant 0 : i32
    %c0_i32_0 = arith.constant 0 : i32
    return %arg0, %c0_i32 : i32, i32
  }
  func.func @transform_8(%arg0: i32) -> (i32, i32) {
    %c0_i32 = arith.constant 0 : i32
    %c0_i32_0 = arith.constant 0 : i32
    return %arg0, %c0_i32 : i32, i32
  }
}

module attributes {stable_mosaic.version = 11 : i64} {
  func.func @_attention_kernel(%arg0: i32, %arg1: memref<2x8x32xbf16, #tpu.memory_space<vmem>>, %arg2: memref<8x1xf32, #tpu.memory_space<vmem>>, %arg3: memref<2x8x32xbf16, #tpu.memory_space<vmem>>, %arg4: memref<8x1xf32, #tpu.memory_space<vmem>>, %arg5: memref<2x8x32xbf16, #tpu.memory_space<vmem>>, %arg6: memref<8x1xf32, #tpu.memory_space<vmem>>, %arg7: memref<2x8x32xf32, #tpu.memory_space<vmem>>) attributes {dimension_semantics = [#tpu.dimension_semantics<parallel>], iteration_bounds = array<i64: 1>, scalar_prefetch = 0 : i64, scratch_operands = 0 : i64, tpu.core_type = #tpu.core_type<tc>, window_params = [{transform_indices = @transform_0, window_bounds = array<i64: 2, 8, 32>}, {transform_indices = @transform_1, window_bounds = array<i64: 8, 1>}, {pipeline_mode = #tpu.pipeline_mode<synchronous>, transform_indices = @transform_2, window_bounds = array<i64: 2, 8, 32>}, {pipeline_mode = #tpu.pipeline_mode<synchronous>, transform_indices = @transform_3, window_bounds = array<i64: 8, 1>}, {pipeline_mode = #tpu.pipeline_mode<synchronous>, transform_indices = @transform_4, window_bounds = array<i64: 2, 8, 32>}, {pipeline_mode = #tpu.pipeline_mode<synchronous>, transform_indices = @transform_5, window_bounds = array<i64: 8, 1>}, {transform_indices = @transform_6, window_bounds = array<i64: 2, 8, 32>}]} {
    %c0 = arith.constant 0 : index
    %c0_0 = arith.constant 0 : index
    %c0_1 = arith.constant 0 : index
    %0 = vector.load %arg1[%c0, %c0_0, %c0_1] : memref<2x8x32xbf16, #tpu.memory_space<vmem>>, vector<2x8x32xbf16>
    %c0_2 = arith.constant 0 : index
    %c0_3 = arith.constant 0 : index
    %c0_4 = arith.constant 0 : index
    %1 = vector.load %arg3[%c0_2, %c0_3, %c0_4] : memref<2x8x32xbf16, #tpu.memory_space<vmem>>, vector<2x8x32xbf16>
    %c0_5 = arith.constant 0 : index
    %c0_6 = arith.constant 0 : index
    %c0_7 = arith.constant 0 : index
    %2 = vector.load %arg5[%c0_5, %c0_6, %c0_7] : memref<2x8x32xbf16, #tpu.memory_space<vmem>>, vector<2x8x32xbf16>
    %c0_8 = arith.constant 0 : index
    %c0_9 = arith.constant 0 : index
    %3 = vector.load %arg2[%c0_8, %c0_9] : memref<8x1xf32, #tpu.memory_space<vmem>>, vector<8x1xf32>
    %4 = vector.shape_cast %3 : vector<8x1xf32> to vector<1x8x1xf32>
    %c0_10 = arith.constant 0 : index
    %c0_11 = arith.constant 0 : index
    %5 = vector.load %arg4[%c0_10, %c0_11] : memref<8x1xf32, #tpu.memory_space<vmem>>, vector<8x1xf32>
    %6 = vector.shape_cast %5 : vector<8x1xf32> to vector<1x1x8xf32>
    %c0_12 = arith.constant 0 : index
    %c0_13 = arith.constant 0 : index
    %7 = vector.load %arg6[%c0_12, %c0_13] : memref<8x1xf32, #tpu.memory_space<vmem>>, vector<8x1xf32>
    %8 = vector.shape_cast %7 : vector<8x1xf32> to vector<1x8x1xf32>
    %cst = arith.constant 0.353553385 : f32
    %9 = vector.broadcast %cst : f32 to vector<1x8x1xf32>
    %10 = arith.mulf %4, %9 : vector<1x8x1xf32>
    %11 = vector.broadcast %10 : vector<1x8x1xf32> to vector<1x8x8xf32>
    %12 = vector.broadcast %6 : vector<1x1x8xf32> to vector<1x8x8xf32>
    %13 = arith.mulf %11, %12 : vector<1x8x8xf32>
    %14 = vector.extract_strided_slice %0 {offsets = [0, 0, 0], sizes = [2, 8, 8], strides = [1, 1, 1]} : vector<2x8x32xbf16> to vector<2x8x8xbf16>
    %15 = vector.extract_strided_slice %1 {offsets = [0, 0, 0], sizes = [2, 8, 8], strides = [1, 1, 1]} : vector<2x8x32xbf16> to vector<2x8x8xbf16>
    "tpu.trace_start"() <{level = 10 : i32, message = "bqd,bkd->bqk"}> : () -> ()
    %cst_14 = arith.constant dense<0.000000e+00> : vector<2x8x8xf32>
    %16 = tpu.matmul %14, %15, %cst_14 {dimension_numbers = #tpu.dot_dimension_numbers<[2], [2], [1], [1], [0, 0, 0, 1, 1, 1], [0], [0]>} : vector<2x8x8xbf16>, vector<2x8x8xbf16>, vector<2x8x8xf32> -> vector<2x8x8xf32>
    "tpu.trace_stop"() : () -> ()
    %17 = vector.broadcast %13 : vector<1x8x8xf32> to vector<2x8x8xf32>
    %18 = arith.mulf %16, %17 : vector<2x8x8xf32>
    %cst_15 = arith.constant dense<0xFF800000> : vector<2x8xf32>
    %19 = vector.multi_reduction <maximumf>, %18, %cst_15 [2] : vector<2x8x8xf32> to vector<2x8xf32>
    %20 = vector.shape_cast %19 : vector<2x8xf32> to vector<2x8x1xf32>
    %21 = vector.broadcast %20 : vector<2x8x1xf32> to vector<2x8x8xf32>
    %22 = arith.subf %18, %21 : vector<2x8x8xf32>
    %23 = math.exp %22 : vector<2x8x8xf32>
    %cst_16 = arith.constant dense<0.000000e+00> : vector<2x8xf32>
    %24 = vector.multi_reduction <add>, %23, %cst_16 [2] : vector<2x8x8xf32> to vector<2x8xf32>
    %25 = vector.shape_cast %24 : vector<2x8xf32> to vector<2x8x1xf32>
    %cst_17 = arith.constant 1.000000e+00 : f32
    %26 = vector.broadcast %cst_17 : f32 to vector<2x8x1xf32>
    %27 = arith.divf %26, %25 : vector<2x8x1xf32>
    %cst_18 = arith.constant dense<0xFF800000> : vector<8x1xf32>
    %28 = vector.multi_reduction <maximumf>, %27, %cst_18 [0] : vector<2x8x1xf32> to vector<8x1xf32>
    %29 = vector.shape_cast %28 : vector<8x1xf32> to vector<1x8x1xf32>
    %30 = vector.extract_strided_slice %0 {offsets = [0, 0, 8], sizes = [2, 8, 8], strides = [1, 1, 1]} : vector<2x8x32xbf16> to vector<2x8x8xbf16>
    %31 = vector.extract_strided_slice %1 {offsets = [0, 0, 8], sizes = [2, 8, 8], strides = [1, 1, 1]} : vector<2x8x32xbf16> to vector<2x8x8xbf16>
    "tpu.trace_start"() <{level = 10 : i32, message = "bqd,bkd->bqk"}> : () -> ()
    %cst_19 = arith.constant dense<0.000000e+00> : vector<2x8x8xf32>
    %32 = tpu.matmul %30, %31, %cst_19 {dimension_numbers = #tpu.dot_dimension_numbers<[2], [2], [1], [1], [0, 0, 0, 1, 1, 1], [0], [0]>} : vector<2x8x8xbf16>, vector<2x8x8xbf16>, vector<2x8x8xf32> -> vector<2x8x8xf32>
    "tpu.trace_stop"() : () -> ()
    %33 = vector.broadcast %13 : vector<1x8x8xf32> to vector<2x8x8xf32>
    %34 = arith.mulf %32, %33 : vector<2x8x8xf32>
    %cst_20 = arith.constant dense<0xFF800000> : vector<2x8xf32>
    %35 = vector.multi_reduction <maximumf>, %34, %cst_20 [2] : vector<2x8x8xf32> to vector<2x8xf32>
    %36 = vector.shape_cast %35 : vector<2x8xf32> to vector<2x8x1xf32>
    %37 = vector.broadcast %36 : vector<2x8x1xf32> to vector<2x8x8xf32>
    %38 = arith.subf %34, %37 : vector<2x8x8xf32>
    %39 = math.exp %38 : vector<2x8x8xf32>
    %cst_21 = arith.constant dense<0.000000e+00> : vector<2x8xf32>
    %40 = vector.multi_reduction <add>, %39, %cst_21 [2] : vector<2x8x8xf32> to vector<2x8xf32>
    %41 = vector.shape_cast %40 : vector<2x8xf32> to vector<2x8x1xf32>
    %cst_22 = arith.constant 1.000000e+00 : f32
    %42 = vector.broadcast %cst_22 : f32 to vector<2x8x1xf32>
    %43 = arith.divf %42, %41 : vector<2x8x1xf32>
    %cst_23 = arith.constant dense<0xFF800000> : vector<8x1xf32>
    %44 = vector.multi_reduction <maximumf>, %43, %cst_23 [0] : vector<2x8x1xf32> to vector<8x1xf32>
    %45 = vector.shape_cast %44 : vector<8x1xf32> to vector<1x8x1xf32>
    %46 = arith.maximumf %29, %45 : vector<1x8x1xf32>
    %47 = vector.extract_strided_slice %0 {offsets = [0, 0, 16], sizes = [2, 8, 8], strides = [1, 1, 1]} : vector<2x8x32xbf16> to vector<2x8x8xbf16>
    %48 = vector.extract_strided_slice %1 {offsets = [0, 0, 16], sizes = [2, 8, 8], strides = [1, 1, 1]} : vector<2x8x32xbf16> to vector<2x8x8xbf16>
    "tpu.trace_start"() <{level = 10 : i32, message = "bqd,bkd->bqk"}> : () -> ()
    %cst_24 = arith.constant dense<0.000000e+00> : vector<2x8x8xf32>
    %49 = tpu.matmul %47, %48, %cst_24 {dimension_numbers = #tpu.dot_dimension_numbers<[2], [2], [1], [1], [0, 0, 0, 1, 1, 1], [0], [0]>} : vector<2x8x8xbf16>, vector<2x8x8xbf16>, vector<2x8x8xf32> -> vector<2x8x8xf32>
    "tpu.trace_stop"() : () -> ()
    %50 = vector.broadcast %13 : vector<1x8x8xf32> to vector<2x8x8xf32>
    %51 = arith.mulf %49, %50 : vector<2x8x8xf32>
    %cst_25 = arith.constant dense<0xFF800000> : vector<2x8xf32>
    %52 = vector.multi_reduction <maximumf>, %51, %cst_25 [2] : vector<2x8x8xf32> to vector<2x8xf32>
    %53 = vector.shape_cast %52 : vector<2x8xf32> to vector<2x8x1xf32>
    %54 = vector.broadcast %53 : vector<2x8x1xf32> to vector<2x8x8xf32>
    %55 = arith.subf %51, %54 : vector<2x8x8xf32>
    %56 = math.exp %55 : vector<2x8x8xf32>
    %cst_26 = arith.constant dense<0.000000e+00> : vector<2x8xf32>
    %57 = vector.multi_reduction <add>, %56, %cst_26 [2] : vector<2x8x8xf32> to vector<2x8xf32>
    %58 = vector.shape_cast %57 : vector<2x8xf32> to vector<2x8x1xf32>
    %cst_27 = arith.constant 1.000000e+00 : f32
    %59 = vector.broadcast %cst_27 : f32 to vector<2x8x1xf32>
    %60 = arith.divf %59, %58 : vector<2x8x1xf32>
    %cst_28 = arith.constant dense<0xFF800000> : vector<8x1xf32>
    %61 = vector.multi_reduction <maximumf>, %60, %cst_28 [0] : vector<2x8x1xf32> to vector<8x1xf32>
    %62 = vector.shape_cast %61 : vector<8x1xf32> to vector<1x8x1xf32>
    %63 = arith.maximumf %46, %62 : vector<1x8x1xf32>
    %64 = vector.extract_strided_slice %0 {offsets = [0, 0, 24], sizes = [2, 8, 8], strides = [1, 1, 1]} : vector<2x8x32xbf16> to vector<2x8x8xbf16>
    %65 = vector.extract_strided_slice %1 {offsets = [0, 0, 24], sizes = [2, 8, 8], strides = [1, 1, 1]} : vector<2x8x32xbf16> to vector<2x8x8xbf16>
    "tpu.trace_start"() <{level = 10 : i32, message = "bqd,bkd->bqk"}> : () -> ()
    %cst_29 = arith.constant dense<0.000000e+00> : vector<2x8x8xf32>
    %66 = tpu.matmul %64, %65, %cst_29 {dimension_numbers = #tpu.dot_dimension_numbers<[2], [2], [1], [1], [0, 0, 0, 1, 1, 1], [0], [0]>} : vector<2x8x8xbf16>, vector<2x8x8xbf16>, vector<2x8x8xf32> -> vector<2x8x8xf32>
    "tpu.trace_stop"() : () -> ()
    %67 = vector.broadcast %13 : vector<1x8x8xf32> to vector<2x8x8xf32>
    %68 = arith.mulf %66, %67 : vector<2x8x8xf32>
    %cst_30 = arith.constant dense<0xFF800000> : vector<2x8xf32>
    %69 = vector.multi_reduction <maximumf>, %68, %cst_30 [2] : vector<2x8x8xf32> to vector<2x8xf32>
    %70 = vector.shape_cast %69 : vector<2x8xf32> to vector<2x8x1xf32>
    %71 = vector.broadcast %70 : vector<2x8x1xf32> to vector<2x8x8xf32>
    %72 = arith.subf %68, %71 : vector<2x8x8xf32>
    %73 = math.exp %72 : vector<2x8x8xf32>
    %cst_31 = arith.constant dense<0.000000e+00> : vector<2x8xf32>
    %74 = vector.multi_reduction <add>, %73, %cst_31 [2] : vector<2x8x8xf32> to vector<2x8xf32>
    %75 = vector.shape_cast %74 : vector<2x8xf32> to vector<2x8x1xf32>
    %cst_32 = arith.constant 1.000000e+00 : f32
    %76 = vector.broadcast %cst_32 : f32 to vector<2x8x1xf32>
    %77 = arith.divf %76, %75 : vector<2x8x1xf32>
    %cst_33 = arith.constant dense<0xFF800000> : vector<8x1xf32>
    %78 = vector.multi_reduction <maximumf>, %77, %cst_33 [0] : vector<2x8x1xf32> to vector<8x1xf32>
    %79 = vector.shape_cast %78 : vector<8x1xf32> to vector<1x8x1xf32>
    %80 = arith.maximumf %63, %79 : vector<1x8x1xf32>
    %cst_34 = arith.constant 0.000000e+00 : f32
    %81 = vector.broadcast %cst_34 : f32 to vector<1x8x1xf32>
    %82 = arith.cmpf ogt, %80, %81 : vector<1x8x1xf32>
    %cst_35 = arith.constant 1.270000e+02 : f32
    %83 = vector.broadcast %cst_35 : f32 to vector<1x8x1xf32>
    %84 = arith.divf %80, %83 : vector<1x8x1xf32>
    %cst_36 = arith.constant 1.000000e+00 : f32
    %85 = vector.broadcast %cst_36 : f32 to vector<1x8x1xf32>
    %86 = arith.select %82, %84, %85 : vector<1x8x1xi1>, vector<1x8x1xf32>
    %cst_37 = arith.constant 1.000000e+00 : f32
    %87 = vector.broadcast %cst_37 : f32 to vector<1x8x1xf32>
    %88 = arith.divf %87, %86 : vector<1x8x1xf32>
    %89 = vector.extract_strided_slice %0 {offsets = [0, 0, 0], sizes = [2, 8, 8], strides = [1, 1, 1]} : vector<2x8x32xbf16> to vector<2x8x8xbf16>
    %90 = vector.extract_strided_slice %1 {offsets = [0, 0, 0], sizes = [2, 8, 8], strides = [1, 1, 1]} : vector<2x8x32xbf16> to vector<2x8x8xbf16>
    "tpu.trace_start"() <{level = 10 : i32, message = "bqd,bkd->bqk"}> : () -> ()
    %cst_38 = arith.constant dense<0.000000e+00> : vector<2x8x8xf32>
    %91 = tpu.matmul %89, %90, %cst_38 {dimension_numbers = #tpu.dot_dimension_numbers<[2], [2], [1], [1], [0, 0, 0, 1, 1, 1], [0], [0]>} : vector<2x8x8xbf16>, vector<2x8x8xbf16>, vector<2x8x8xf32> -> vector<2x8x8xf32>
    "tpu.trace_stop"() : () -> ()
    %92 = vector.broadcast %13 : vector<1x8x8xf32> to vector<2x8x8xf32>
    %93 = arith.mulf %91, %92 : vector<2x8x8xf32>
    %94 = vector.broadcast %20 : vector<2x8x1xf32> to vector<2x8x8xf32>
    %95 = arith.subf %93, %94 : vector<2x8x8xf32>
    %96 = math.exp %95 : vector<2x8x8xf32>
    %97 = vector.broadcast %88 : vector<1x8x1xf32> to vector<2x8x1xf32>
    %98 = arith.mulf %27, %97 : vector<2x8x1xf32>
    %99 = vector.broadcast %98 : vector<2x8x1xf32> to vector<2x8x8xf32>
    %100 = arith.mulf %96, %99 : vector<2x8x8xf32>
    %101 = math.roundeven %100 : vector<2x8x8xf32>
    %cst_39 = arith.constant -1.280000e+02 : f32
    %cst_40 = arith.constant 1.270000e+02 : f32
    %102 = vector.broadcast %cst_39 : f32 to vector<2x8x8xf32>
    %103 = arith.maximumf %102, %101 : vector<2x8x8xf32>
    %104 = vector.broadcast %cst_40 : f32 to vector<2x8x8xf32>
    %105 = arith.minimumf %104, %103 : vector<2x8x8xf32>
    %106 = arith.truncf %105 : vector<2x8x8xf32> to vector<2x8x8xbf16>
    %107 = vector.extract_strided_slice %2 {offsets = [0, 0, 0], sizes = [2, 8, 8], strides = [1, 1, 1]} : vector<2x8x32xbf16> to vector<2x8x8xbf16>
    %108 = arith.extf %107 : vector<2x8x8xbf16> to vector<2x8x8xf32>
    %109 = vector.broadcast %8 : vector<1x8x1xf32> to vector<2x8x8xf32>
    %110 = arith.mulf %108, %109 : vector<2x8x8xf32>
    %111 = arith.truncf %110 : vector<2x8x8xf32> to vector<2x8x8xbf16>
    %112 = arith.extf %111 : vector<2x8x8xbf16> to vector<2x8x8xf32>
    %113 = arith.subf %110, %112 : vector<2x8x8xf32>
    %114 = arith.truncf %113 : vector<2x8x8xf32> to vector<2x8x8xbf16>
    "tpu.trace_start"() <{level = 10 : i32, message = "bqk,bkd->bqd"}> : () -> ()
    %cst_41 = arith.constant dense<0.000000e+00> : vector<2x8x8xf32>
    %115 = tpu.matmul %106, %111, %cst_41 {dimension_numbers = #tpu.dot_dimension_numbers<[2], [1], [1], [2], [0, 0, 0, 1, 1, 2], [0], [0]>} : vector<2x8x8xbf16>, vector<2x8x8xbf16>, vector<2x8x8xf32> -> vector<2x8x8xf32>
    %cst_42 = arith.constant dense<0.000000e+00> : vector<2x8x8xf32>
    %116 = tpu.matmul %106, %114, %cst_42 {dimension_numbers = #tpu.dot_dimension_numbers<[2], [1], [1], [2], [0, 0, 0, 1, 1, 2], [0], [0]>} : vector<2x8x8xbf16>, vector<2x8x8xbf16>, vector<2x8x8xf32> -> vector<2x8x8xf32>
    "tpu.trace_stop"() : () -> ()
    %117 = arith.addf %115, %116 : vector<2x8x8xf32>
    %118 = vector.extract_strided_slice %0 {offsets = [0, 0, 8], sizes = [2, 8, 8], strides = [1, 1, 1]} : vector<2x8x32xbf16> to vector<2x8x8xbf16>
    %119 = vector.extract_strided_slice %1 {offsets = [0, 0, 8], sizes = [2, 8, 8], strides = [1, 1, 1]} : vector<2x8x32xbf16> to vector<2x8x8xbf16>
    "tpu.trace_start"() <{level = 10 : i32, message = "bqd,bkd->bqk"}> : () -> ()
    %cst_43 = arith.constant dense<0.000000e+00> : vector<2x8x8xf32>
    %120 = tpu.matmul %118, %119, %cst_43 {dimension_numbers = #tpu.dot_dimension_numbers<[2], [2], [1], [1], [0, 0, 0, 1, 1, 1], [0], [0]>} : vector<2x8x8xbf16>, vector<2x8x8xbf16>, vector<2x8x8xf32> -> vector<2x8x8xf32>
    "tpu.trace_stop"() : () -> ()
    %121 = vector.broadcast %13 : vector<1x8x8xf32> to vector<2x8x8xf32>
    %122 = arith.mulf %120, %121 : vector<2x8x8xf32>
    %123 = vector.broadcast %36 : vector<2x8x1xf32> to vector<2x8x8xf32>
    %124 = arith.subf %122, %123 : vector<2x8x8xf32>
    %125 = math.exp %124 : vector<2x8x8xf32>
    %126 = vector.broadcast %88 : vector<1x8x1xf32> to vector<2x8x1xf32>
    %127 = arith.mulf %43, %126 : vector<2x8x1xf32>
    %128 = vector.broadcast %127 : vector<2x8x1xf32> to vector<2x8x8xf32>
    %129 = arith.mulf %125, %128 : vector<2x8x8xf32>
    %130 = math.roundeven %129 : vector<2x8x8xf32>
    %cst_44 = arith.constant -1.280000e+02 : f32
    %cst_45 = arith.constant 1.270000e+02 : f32
    %131 = vector.broadcast %cst_44 : f32 to vector<2x8x8xf32>
    %132 = arith.maximumf %131, %130 : vector<2x8x8xf32>
    %133 = vector.broadcast %cst_45 : f32 to vector<2x8x8xf32>
    %134 = arith.minimumf %133, %132 : vector<2x8x8xf32>
    %135 = arith.truncf %134 : vector<2x8x8xf32> to vector<2x8x8xbf16>
    %136 = vector.extract_strided_slice %2 {offsets = [0, 0, 8], sizes = [2, 8, 8], strides = [1, 1, 1]} : vector<2x8x32xbf16> to vector<2x8x8xbf16>
    %137 = arith.extf %136 : vector<2x8x8xbf16> to vector<2x8x8xf32>
    %138 = vector.broadcast %8 : vector<1x8x1xf32> to vector<2x8x8xf32>
    %139 = arith.mulf %137, %138 : vector<2x8x8xf32>
    %140 = arith.truncf %139 : vector<2x8x8xf32> to vector<2x8x8xbf16>
    %141 = arith.extf %140 : vector<2x8x8xbf16> to vector<2x8x8xf32>
    %142 = arith.subf %139, %141 : vector<2x8x8xf32>
    %143 = arith.truncf %142 : vector<2x8x8xf32> to vector<2x8x8xbf16>
    "tpu.trace_start"() <{level = 10 : i32, message = "bqk,bkd->bqd"}> : () -> ()
    %cst_46 = arith.constant dense<0.000000e+00> : vector<2x8x8xf32>
    %144 = tpu.matmul %135, %140, %cst_46 {dimension_numbers = #tpu.dot_dimension_numbers<[2], [1], [1], [2], [0, 0, 0, 1, 1, 2], [0], [0]>} : vector<2x8x8xbf16>, vector<2x8x8xbf16>, vector<2x8x8xf32> -> vector<2x8x8xf32>
    %cst_47 = arith.constant dense<0.000000e+00> : vector<2x8x8xf32>
    %145 = tpu.matmul %135, %143, %cst_47 {dimension_numbers = #tpu.dot_dimension_numbers<[2], [1], [1], [2], [0, 0, 0, 1, 1, 2], [0], [0]>} : vector<2x8x8xbf16>, vector<2x8x8xbf16>, vector<2x8x8xf32> -> vector<2x8x8xf32>
    "tpu.trace_stop"() : () -> ()
    %146 = arith.addf %144, %145 : vector<2x8x8xf32>
    %147 = vector.extract_strided_slice %0 {offsets = [0, 0, 16], sizes = [2, 8, 8], strides = [1, 1, 1]} : vector<2x8x32xbf16> to vector<2x8x8xbf16>
    %148 = vector.extract_strided_slice %1 {offsets = [0, 0, 16], sizes = [2, 8, 8], strides = [1, 1, 1]} : vector<2x8x32xbf16> to vector<2x8x8xbf16>
    "tpu.trace_start"() <{level = 10 : i32, message = "bqd,bkd->bqk"}> : () -> ()
    %cst_48 = arith.constant dense<0.000000e+00> : vector<2x8x8xf32>
    %149 = tpu.matmul %147, %148, %cst_48 {dimension_numbers = #tpu.dot_dimension_numbers<[2], [2], [1], [1], [0, 0, 0, 1, 1, 1], [0], [0]>} : vector<2x8x8xbf16>, vector<2x8x8xbf16>, vector<2x8x8xf32> -> vector<2x8x8xf32>
    "tpu.trace_stop"() : () -> ()
    %150 = vector.broadcast %13 : vector<1x8x8xf32> to vector<2x8x8xf32>
    %151 = arith.mulf %149, %150 : vector<2x8x8xf32>
    %152 = vector.broadcast %53 : vector<2x8x1xf32> to vector<2x8x8xf32>
    %153 = arith.subf %151, %152 : vector<2x8x8xf32>
    %154 = math.exp %153 : vector<2x8x8xf32>
    %155 = vector.broadcast %88 : vector<1x8x1xf32> to vector<2x8x1xf32>
    %156 = arith.mulf %60, %155 : vector<2x8x1xf32>
    %157 = vector.broadcast %156 : vector<2x8x1xf32> to vector<2x8x8xf32>
    %158 = arith.mulf %154, %157 : vector<2x8x8xf32>
    %159 = math.roundeven %158 : vector<2x8x8xf32>
    %cst_49 = arith.constant -1.280000e+02 : f32
    %cst_50 = arith.constant 1.270000e+02 : f32
    %160 = vector.broadcast %cst_49 : f32 to vector<2x8x8xf32>
    %161 = arith.maximumf %160, %159 : vector<2x8x8xf32>
    %162 = vector.broadcast %cst_50 : f32 to vector<2x8x8xf32>
    %163 = arith.minimumf %162, %161 : vector<2x8x8xf32>
    %164 = arith.truncf %163 : vector<2x8x8xf32> to vector<2x8x8xbf16>
    %165 = vector.extract_strided_slice %2 {offsets = [0, 0, 16], sizes = [2, 8, 8], strides = [1, 1, 1]} : vector<2x8x32xbf16> to vector<2x8x8xbf16>
    %166 = arith.extf %165 : vector<2x8x8xbf16> to vector<2x8x8xf32>
    %167 = vector.broadcast %8 : vector<1x8x1xf32> to vector<2x8x8xf32>
    %168 = arith.mulf %166, %167 : vector<2x8x8xf32>
    %169 = arith.truncf %168 : vector<2x8x8xf32> to vector<2x8x8xbf16>
    %170 = arith.extf %169 : vector<2x8x8xbf16> to vector<2x8x8xf32>
    %171 = arith.subf %168, %170 : vector<2x8x8xf32>
    %172 = arith.truncf %171 : vector<2x8x8xf32> to vector<2x8x8xbf16>
    "tpu.trace_start"() <{level = 10 : i32, message = "bqk,bkd->bqd"}> : () -> ()
    %cst_51 = arith.constant dense<0.000000e+00> : vector<2x8x8xf32>
    %173 = tpu.matmul %164, %169, %cst_51 {dimension_numbers = #tpu.dot_dimension_numbers<[2], [1], [1], [2], [0, 0, 0, 1, 1, 2], [0], [0]>} : vector<2x8x8xbf16>, vector<2x8x8xbf16>, vector<2x8x8xf32> -> vector<2x8x8xf32>
    %cst_52 = arith.constant dense<0.000000e+00> : vector<2x8x8xf32>
    %174 = tpu.matmul %164, %172, %cst_52 {dimension_numbers = #tpu.dot_dimension_numbers<[2], [1], [1], [2], [0, 0, 0, 1, 1, 2], [0], [0]>} : vector<2x8x8xbf16>, vector<2x8x8xbf16>, vector<2x8x8xf32> -> vector<2x8x8xf32>
    "tpu.trace_stop"() : () -> ()
    %175 = arith.addf %173, %174 : vector<2x8x8xf32>
    %176 = vector.extract_strided_slice %0 {offsets = [0, 0, 24], sizes = [2, 8, 8], strides = [1, 1, 1]} : vector<2x8x32xbf16> to vector<2x8x8xbf16>
    %177 = vector.extract_strided_slice %1 {offsets = [0, 0, 24], sizes = [2, 8, 8], strides = [1, 1, 1]} : vector<2x8x32xbf16> to vector<2x8x8xbf16>
    "tpu.trace_start"() <{level = 10 : i32, message = "bqd,bkd->bqk"}> : () -> ()
    %cst_53 = arith.constant dense<0.000000e+00> : vector<2x8x8xf32>
    %178 = tpu.matmul %176, %177, %cst_53 {dimension_numbers = #tpu.dot_dimension_numbers<[2], [2], [1], [1], [0, 0, 0, 1, 1, 1], [0], [0]>} : vector<2x8x8xbf16>, vector<2x8x8xbf16>, vector<2x8x8xf32> -> vector<2x8x8xf32>
    "tpu.trace_stop"() : () -> ()
    %179 = vector.broadcast %13 : vector<1x8x8xf32> to vector<2x8x8xf32>
    %180 = arith.mulf %178, %179 : vector<2x8x8xf32>
    %181 = vector.broadcast %70 : vector<2x8x1xf32> to vector<2x8x8xf32>
    %182 = arith.subf %180, %181 : vector<2x8x8xf32>
    %183 = math.exp %182 : vector<2x8x8xf32>
    %184 = vector.broadcast %88 : vector<1x8x1xf32> to vector<2x8x1xf32>
    %185 = arith.mulf %77, %184 : vector<2x8x1xf32>
    %186 = vector.broadcast %185 : vector<2x8x1xf32> to vector<2x8x8xf32>
    %187 = arith.mulf %183, %186 : vector<2x8x8xf32>
    %188 = math.roundeven %187 : vector<2x8x8xf32>
    %cst_54 = arith.constant -1.280000e+02 : f32
    %cst_55 = arith.constant 1.270000e+02 : f32
    %189 = vector.broadcast %cst_54 : f32 to vector<2x8x8xf32>
    %190 = arith.maximumf %189, %188 : vector<2x8x8xf32>
    %191 = vector.broadcast %cst_55 : f32 to vector<2x8x8xf32>
    %192 = arith.minimumf %191, %190 : vector<2x8x8xf32>
    %193 = arith.truncf %192 : vector<2x8x8xf32> to vector<2x8x8xbf16>
    %194 = vector.extract_strided_slice %2 {offsets = [0, 0, 24], sizes = [2, 8, 8], strides = [1, 1, 1]} : vector<2x8x32xbf16> to vector<2x8x8xbf16>
    %195 = arith.extf %194 : vector<2x8x8xbf16> to vector<2x8x8xf32>
    %196 = vector.broadcast %8 : vector<1x8x1xf32> to vector<2x8x8xf32>
    %197 = arith.mulf %195, %196 : vector<2x8x8xf32>
    %198 = arith.truncf %197 : vector<2x8x8xf32> to vector<2x8x8xbf16>
    %199 = arith.extf %198 : vector<2x8x8xbf16> to vector<2x8x8xf32>
    %200 = arith.subf %197, %199 : vector<2x8x8xf32>
    %201 = arith.truncf %200 : vector<2x8x8xf32> to vector<2x8x8xbf16>
    "tpu.trace_start"() <{level = 10 : i32, message = "bqk,bkd->bqd"}> : () -> ()
    %cst_56 = arith.constant dense<0.000000e+00> : vector<2x8x8xf32>
    %202 = tpu.matmul %193, %198, %cst_56 {dimension_numbers = #tpu.dot_dimension_numbers<[2], [1], [1], [2], [0, 0, 0, 1, 1, 2], [0], [0]>} : vector<2x8x8xbf16>, vector<2x8x8xbf16>, vector<2x8x8xf32> -> vector<2x8x8xf32>
    %cst_57 = arith.constant dense<0.000000e+00> : vector<2x8x8xf32>
    %203 = tpu.matmul %193, %201, %cst_57 {dimension_numbers = #tpu.dot_dimension_numbers<[2], [1], [1], [2], [0, 0, 0, 1, 1, 2], [0], [0]>} : vector<2x8x8xbf16>, vector<2x8x8xbf16>, vector<2x8x8xf32> -> vector<2x8x8xf32>
    "tpu.trace_stop"() : () -> ()
    %204 = arith.addf %202, %203 : vector<2x8x8xf32>
    %205 = tpu.concatenate %117, %146, %175, %204 in 2 : vector<2x8x8xf32>, vector<2x8x8xf32>, vector<2x8x8xf32>, vector<2x8x8xf32> -> vector<2x8x32xf32>
    %206 = vector.broadcast %86 : vector<1x8x1xf32> to vector<2x8x32xf32>
    %207 = arith.mulf %205, %206 : vector<2x8x32xf32>
    %c0_58 = arith.constant 0 : index
    %c0_59 = arith.constant 0 : index
    %c0_60 = arith.constant 0 : index
    %208 = vector.load %arg7[%c0_58, %c0_59, %c0_60] : memref<2x8x32xf32, #tpu.memory_space<vmem>>, vector<2x8x32xf32>
    tpu.vector_store %arg7[%c0_58, %c0_59, %c0_60], %207 {strides = array<i32>} : memref<2x8x32xf32, #tpu.memory_space<vmem>>, vector<2x8x32xf32>,
    return
  }
  func.func @transform_0(%arg0: i32) -> (i32, i32, i32) {
    %c0_i32 = arith.constant 0 : i32
    %c0_i32_0 = arith.constant 0 : i32
    %c0_i32_1 = arith.constant 0 : i32
    return %c0_i32, %arg0, %c0_i32_0 : i32, i32, i32
  }
  func.func @transform_1(%arg0: i32) -> (i32, i32) {
    %c0_i32 = arith.constant 0 : i32
    %c0_i32_0 = arith.constant 0 : i32
    return %arg0, %c0_i32 : i32, i32
  }
  func.func @transform_2(%arg0: i32) -> (i32, i32, i32) {
    %c0_i32 = arith.constant 0 : i32
    %c0_i32_0 = arith.constant 0 : i32
    %c0_i32_1 = arith.constant 0 : i32
    %c0_i32_2 = arith.constant 0 : i32
    return %c0_i32, %c0_i32_0, %c0_i32_1 : i32, i32, i32
  }
  func.func @transform_3(%arg0: i32) -> (i32, i32) {
    %c0_i32 = arith.constant 0 : i32
    %c0_i32_0 = arith.constant 0 : i32
    %c0_i32_1 = arith.constant 0 : i32
    return %c0_i32, %c0_i32_0 : i32, i32
  }
  func.func @transform_4(%arg0: i32) -> (i32, i32, i32) {
    %c0_i32 = arith.constant 0 : i32
    %c0_i32_0 = arith.constant 0 : i32
    %c0_i32_1 = arith.constant 0 : i32
    %c0_i32_2 = arith.constant 0 : i32
    return %c0_i32, %c0_i32_0, %c0_i32_1 : i32, i32, i32
  }
  func.func @transform_5(%arg0: i32) -> (i32, i32) {
    %c0_i32 = arith.constant 0 : i32
    %c0_i32_0 = arith.constant 0 : i32
    %c0_i32_1 = arith.constant 0 : i32
    return %c0_i32, %c0_i32_0 : i32, i32
  }
  func.func @transform_6(%arg0: i32) -> (i32, i32, i32) {
    %c0_i32 = arith.constant 0 : i32
    %c0_i32_0 = arith.constant 0 : i32
    %c0_i32_1 = arith.constant 0 : i32
    return %c0_i32, %arg0, %c0_i32_0 : i32, i32, i32
  }
}

module attributes {stable_mosaic.version = 11 : i64} {
  func.func @_proj_kernel(%arg0: i32, %arg1: i32, %arg2: memref<2x8x32xbf16, #tpu.memory_space<vmem>>, %arg3: memref<8x1xf32, #tpu.memory_space<vmem>>, %arg4: memref<32x32xbf16, #tpu.memory_space<vmem>>, %arg5: memref<1x32xf32, #tpu.memory_space<vmem>>, %arg6: memref<2x8x32xf32, #tpu.memory_space<vmem>>) attributes {dimension_semantics = [#tpu.dimension_semantics<parallel>, #tpu.dimension_semantics<parallel>], iteration_bounds = array<i64: 1, 1>, scalar_prefetch = 0 : i64, scratch_operands = 0 : i64, tpu.core_type = #tpu.core_type<tc>, window_params = [{transform_indices = @transform_0, window_bounds = array<i64: 2, 8, 32>}, {transform_indices = @transform_1, window_bounds = array<i64: 8, 1>}, {transform_indices = @transform_2, window_bounds = array<i64: 32, 32>}, {transform_indices = @transform_3, window_bounds = array<i64: 1, 32>}, {transform_indices = @transform_4, window_bounds = array<i64: 2, 8, 32>}]} {
    %c0 = arith.constant 0 : index
    %c0_0 = arith.constant 0 : index
    %c0_1 = arith.constant 0 : index
    %0 = vector.load %arg2[%c0, %c0_0, %c0_1] : memref<2x8x32xbf16, #tpu.memory_space<vmem>>, vector<2x8x32xbf16>
    %1 = vector.shape_cast %0 : vector<2x8x32xbf16> to vector<16x32xbf16>
    %c0_2 = arith.constant 0 : index
    %c0_3 = arith.constant 0 : index
    %2 = vector.load %arg4[%c0_2, %c0_3] : memref<32x32xbf16, #tpu.memory_space<vmem>>, vector<32x32xbf16>
    %cst = arith.constant dense<0.000000e+00> : vector<16x32xf32>
    %3 = tpu.matmul %1, %2, %cst {dimension_numbers = #tpu.dot_dimension_numbers<[1], [0], [0], [1], [0, 0, 1, 1], [], []>} : vector<16x32xbf16>, vector<32x32xbf16>, vector<16x32xf32> -> vector<16x32xf32>
    %4 = vector.shape_cast %3 : vector<16x32xf32> to vector<2x8x32xf32>
    %c0_4 = arith.constant 0 : index
    %c0_5 = arith.constant 0 : index
    %5 = vector.load %arg3[%c0_4, %c0_5] : memref<8x1xf32, #tpu.memory_space<vmem>>, vector<8x1xf32>
    %6 = vector.shape_cast %5 : vector<8x1xf32> to vector<1x8x1xf32>
    %c0_6 = arith.constant 0 : index
    %c0_7 = arith.constant 0 : index
    %7 = vector.load %arg5[%c0_6, %c0_7] : memref<1x32xf32, #tpu.memory_space<vmem>>, vector<1x32xf32>
    %8 = vector.shape_cast %7 : vector<1x32xf32> to vector<1x1x32xf32>
    %9 = vector.broadcast %6 : vector<1x8x1xf32> to vector<1x8x32xf32>
    %10 = vector.broadcast %8 : vector<1x1x32xf32> to vector<1x8x32xf32>
    %11 = arith.mulf %9, %10 : vector<1x8x32xf32>
    %12 = vector.broadcast %11 : vector<1x8x32xf32> to vector<2x8x32xf32>
    %13 = arith.mulf %4, %12 : vector<2x8x32xf32>
    %c0_8 = arith.constant 0 : index
    %c0_9 = arith.constant 0 : index
    %c0_10 = arith.constant 0 : index
    %14 = vector.load %arg6[%c0_8, %c0_9, %c0_10] : memref<2x8x32xf32, #tpu.memory_space<vmem>>, vector<2x8x32xf32>
    tpu.vector_store %arg6[%c0_8, %c0_9, %c0_10], %13 {strides = array<i32>} : memref<2x8x32xf32, #tpu.memory_space<vmem>>, vector<2x8x32xf32>,
    return
  }
  func.func @transform_0(%arg0: i32, %arg1: i32) -> (i32, i32, i32) {
    %c0_i32 = arith.constant 0 : i32
    %c0_i32_0 = arith.constant 0 : i32
    %c0_i32_1 = arith.constant 0 : i32
    return %c0_i32, %arg0, %c0_i32_0 : i32, i32, i32
  }
  func.func @transform_1(%arg0: i32, %arg1: i32) -> (i32, i32) {
    %c0_i32 = arith.constant 0 : i32
    %c0_i32_0 = arith.constant 0 : i32
    return %arg0, %c0_i32 : i32, i32
  }
  func.func @transform_2(%arg0: i32, %arg1: i32) -> (i32, i32) {
    %c0_i32 = arith.constant 0 : i32
    %c0_i32_0 = arith.constant 0 : i32
    return %c0_i32, %arg1 : i32, i32
  }
  func.func @transform_3(%arg0: i32, %arg1: i32) -> (i32, i32) {
    %c0_i32 = arith.constant 0 : i32
    %c0_i32_0 = arith.constant 0 : i32
    return %c0_i32, %arg1 : i32, i32
  }
  func.func @transform_4(%arg0: i32, %arg1: i32) -> (i32, i32, i32) {
    %c0_i32 = arith.constant 0 : i32
    %c0_i32_0 = arith.constant 0 : i32
    return %c0_i32, %arg0, %arg1 : i32, i32, i32
  }
}

module attributes {stable_mosaic.version = 11 : i64} {
  func.func @_token_quant_kernel(%arg0: i32, %arg1: memref<2x8x32xf32, #tpu.memory_space<vmem>>, %arg2: memref<2x8x32xbf16, #tpu.memory_space<vmem>>, %arg3: memref<8x1xf32, #tpu.memory_space<vmem>>) attributes {dimension_semantics = [#tpu.dimension_semantics<parallel>], iteration_bounds = array<i64: 1>, scalar_prefetch = 0 : i64, scratch_operands = 0 : i64, tpu.core_type = #tpu.core_type<tc>, window_params = [{transform_indices = @transform_0, window_bounds = array<i64: 2, 8, 32>}, {transform_indices = @transform_1, window_bounds = array<i64: 2, 8, 32>}, {transform_indices = @transform_2, window_bounds = array<i64: 8, 1>}]} {
    %c0 = arith.constant 0 : index
    %c0_0 = arith.constant 0 : index
    %c0_1 = arith.constant 0 : index
    %0 = vector.load %arg1[%c0, %c0_0, %c0_1] : memref<2x8x32xf32, #tpu.memory_space<vmem>>, vector<2x8x32xf32>
    %1 = math.absf %0 : vector<2x8x32xf32>
    %cst = arith.constant dense<0xFF800000> : vector<8xf32>
    %2 = vector.multi_reduction <maximumf>, %1, %cst [0, 2] : vector<2x8x32xf32> to vector<8xf32>
    %3 = vector.shape_cast %2 : vector<8xf32> to vector<1x8x1xf32>
    %cst_2 = arith.constant 0.000000e+00 : f32
    %4 = vector.broadcast %cst_2 : f32 to vector<1x8x1xf32>
    %5 = arith.cmpf ogt, %3, %4 : vector<1x8x1xf32>
    %cst_3 = arith.constant 1.270000e+02 : f32
    %6 = vector.broadcast %cst_3 : f32 to vector<1x8x1xf32>
    %7 = arith.divf %3, %6 : vector<1x8x1xf32>
    %cst_4 = arith.constant 1.000000e+00 : f32
    %8 = vector.broadcast %cst_4 : f32 to vector<1x8x1xf32>
    %9 = arith.select %5, %7, %8 : vector<1x8x1xi1>, vector<1x8x1xf32>
    %cst_5 = arith.constant 1.000000e+00 : f32
    %10 = vector.broadcast %cst_5 : f32 to vector<1x8x1xf32>
    %11 = arith.divf %10, %9 : vector<1x8x1xf32>
    %12 = vector.broadcast %11 : vector<1x8x1xf32> to vector<2x8x32xf32>
    %13 = arith.mulf %0, %12 : vector<2x8x32xf32>
    %14 = math.roundeven %13 : vector<2x8x32xf32>
    %cst_6 = arith.constant -1.280000e+02 : f32
    %cst_7 = arith.constant 1.270000e+02 : f32
    %15 = vector.broadcast %cst_6 : f32 to vector<2x8x32xf32>
    %16 = arith.maximumf %15, %14 : vector<2x8x32xf32>
    %17 = vector.broadcast %cst_7 : f32 to vector<2x8x32xf32>
    %18 = arith.minimumf %17, %16 : vector<2x8x32xf32>
    %19 = arith.truncf %18 : vector<2x8x32xf32> to vector<2x8x32xbf16>
    %c0_8 = arith.constant 0 : index
    %c0_9 = arith.constant 0 : index
    %c0_10 = arith.constant 0 : index
    %20 = vector.load %arg2[%c0_8, %c0_9, %c0_10] : memref<2x8x32xbf16, #tpu.memory_space<vmem>>, vector<2x8x32xbf16>
    tpu.vector_store %arg2[%c0_8, %c0_9, %c0_10], %19 {strides = array<i32>} : memref<2x8x32xbf16, #tpu.memory_space<vmem>>, vector<2x8x32xbf16>,
    %21 = vector.shape_cast %9 : vector<1x8x1xf32> to vector<8x1xf32>
    %c0_11 = arith.constant 0 : index
    %c0_12 = arith.constant 0 : index
    %22 = vector.load %arg3[%c0_11, %c0_12] : memref<8x1xf32, #tpu.memory_space<vmem>>, vector<8x1xf32>
    tpu.vector_store %arg3[%c0_11, %c0_12], %21 {strides = array<i32>} : memref<8x1xf32, #tpu.memory_space<vmem>>, vector<8x1xf32>,
    return
  }
  func.func @transform_0(%arg0: i32) -> (i32, i32, i32) {
    %c0_i32 = arith.constant 0 : i32
    %c0_i32_0 = arith.constant 0 : i32
    %c0_i32_1 = arith.constant 0 : i32
    return %c0_i32, %arg0, %c0_i32_0 : i32, i32, i32
  }
  func.func @transform_1(%arg0: i32) -> (i32, i32, i32) {
    %c0_i32 = arith.constant 0 : i32
    %c0_i32_0 = arith.constant 0 : i32
    %c0_i32_1 = arith.constant 0 : i32
    return %c0_i32, %arg0, %c0_i32_0 : i32, i32, i32
  }
  func.func @transform_2(%arg0: i32) -> (i32, i32) {
    %c0_i32 = arith.constant 0 : i32
    %c0_i32_0 = arith.constant 0 : i32
    return %arg0, %c0_i32 : i32, i32
  }
}

</mosaic_0001>

<bundles_post_ra>
// kernel: multi_headed_attention.8
= control target key start
LH: loop header
LB: loop body
LE: loop exit
PB: predicated region body
PF: predicated region fallthrough
CT: control target
= control target key end

     0   :  { %vm24_vm0 = vcmask 261120   ;;  %vm49_vm1 = vcmask 7168   ;;  %vm46_vm5 = vcmask 257024   ;;  %s246_s0 = inlined_call_operand.vmem [shape: f32[2,8,32], index: 0, kind: input, shape index: {}]   ;;  %s247_s2 = inlined_call_operand.vmem [shape: f32[2,8,32], index: 2, kind: input, shape index: {}]   ;;  %s248_s1 = inlined_call_operand.vmem [shape: f32[2,8,32], index: 1, kind: input, shape index: {}]   ;;  %s249_s6 = inlined_call_operand.vmem [shape: f32[8,1], index: 6, kind: output, shape index: {3}]   ;;  %s250_s8 = inlined_call_operand.vmem [shape: f32[8,1], index: 8, kind: output, shape index: {5}]   ;;  %s251_s7 = inlined_call_operand.vmem [shape: f32[8,1], index: 7, kind: output, shape index: {4}]   ;;  %s252_s3 = inlined_call_operand.vmem [shape: bf16[2,8,32], index: 3, kind: output, shape index: {0}]   ;;  %s253_s5 = inlined_call_operand.vmem [shape: bf16[2,8,32], index: 5, kind: output, shape index: {2}]   ;;  %s254_s4 = inlined_call_operand.vmem [shape: bf16[2,8,32], index: 4, kind: output, shape index: {1}]  }
   0x1   :  { %v20_v0 = vld [vmem:[%s246_s0] sm:$0xff]  ;;  %v21_v1 = vld [vmem:[%s246_s0 + $0x8] sm:$0xff] }
   0x2   :  { %v78_v2 = vld [vmem:[%s247_s2] sm:$0xff]  ;;  %v22_v3 = vand.u32 2147483647, %v20_v0  ;;  %v23_v4 = vand.u32 2147483647, %v21_v1  ;;  %v79_v5 = vld [vmem:[%s247_s2 + $0x8] sm:$0xff] }
   0x3   :  { %v51_v6 = vld [vmem:[%s248_s1] sm:$0xff]  ;;  %v80_v7 = vand.u32 2147483647, %v78_v2  ;;  %v81_v8 = vand.u32 2147483647, %v79_v5  ;;  %v52_v9 = vld [vmem:[%s248_s1 + $0x8] sm:$0xff] }
   0x4   :  { %v25_v10 = vsel %vm24_vm0, %v22_v3, -inf  ;;  %v26_v11 = vsel %vm24_vm0, %v23_v4, -inf  ;;  %v53_v12 = vand.u32 2147483647, %v51_v6  ;;  %v54_v13 = vand.u32 2147483647, %v52_v9 }
   0x5   :  { %v27_v14 = vmax.f32 %v25_v10, %v26_v11  ;;  %v82_v15 = vsel %vm24_vm0, %v80_v7, -inf  ;;  %v83_v16 = vsel %vm24_vm0, %v81_v8, -inf }
   0x6   :  { %v84_v17 = vmax.f32 %v82_v15, %v83_v16  ;;  %v55_v18 = vsel %vm24_vm0, %v53_v12, -inf  ;;  %v56_v19 = vsel %vm24_vm0, %v54_v13, -inf }
   0x7   :  { %28 = vmax.xlane.f32.xlu0 %v27_v14  ;;  %v57_v20 = vmax.f32 %v55_v18, %v56_v19 }
   0x8   :  { %85 = vmax.xlane.f32.xlu1 %v84_v17 }
   0xb   :  { %58 = vmax.xlane.f32.xlu0 %v57_v20 }
  0x94   :  { %v29_v21 = vpop.xlane.xlu0 %28 }
  0x95   :  { %vm30_vm2 = vcmp.gt.f32.partialorder %v29_v21, 0.0  ;;  %v32_v22 = vmul.f32 0.007874016, %v29_v21  ;;  %v86_v23 = vpop.xlane.xlu1 %85 }
  0x96   :  { %vm87_vm3 = vcmp.gt.f32.partialorder %v86_v23, 0.0  ;;  %v88_v24 = vmul.f32 0.007874016, %v86_v23 }
  0x97   :  { %v33_v25 = vsel %vm30_vm2, %v32_v22, 1.0 }
  0x98   :  { %135 = vrcp.f32 %v33_v25  ;;  %50 = vst.msk [vmem:[%s249_s6] sm:$0xff] %vm49_vm1, %v33_v25  ;;  %v89_v26 = vsel %vm87_vm3, %v88_v24, 1.0  ;;  %v59_v27 = vpop.xlane.xlu0 %58 }
  0x99   :  { %137 = vrcp.f32 %v89_v26  ;;  %104 = vst.msk [vmem:[%s250_s8] sm:$0xff] %vm49_vm1, %v89_v26  ;;  %vm60_vm4 = vcmp.gt.f32.partialorder %v59_v27, 0.0  ;;  %v61_v28 = vmul.f32 0.007874016, %v59_v27 }
  0x9b   :  { %v62_v29 = vsel %vm60_vm4, %v61_v28, 1.0 }
  0x9c   :  { %139 = vrcp.f32 %v62_v29  ;;  %77 = vst.msk [vmem:[%s251_s7] sm:$0xff] %vm49_vm1, %v62_v29 }
  0xa2   :  { %v136_v30 = vpop.eup %135 }
  0xa3   :  { %v138_v31 = vpop.eup %137  ;;  %v36_v32 = vmul.f32 %v136_v30, %v20_v0  ;;  %v37_v33 = vmul.f32 %v136_v30, %v21_v1 }
  0xa4   :  { %v92_v34 = vmul.f32 %v138_v31, %v78_v2  ;;  %v93_v35 = vmul.f32 %v138_v31, %v79_v5 }
  0xa5   :  { %v129_v36 = vround.rtne.f32 %v36_v32  ;;  %v130_v37 = vround.rtne.f32 %v37_v33 }
  0xa6   :  { %v140_v38 = vpop.eup %139  ;;  %v133_v39 = vround.rtne.f32 %v92_v34  ;;  %v134_v40 = vround.rtne.f32 %v93_v35 }
  0xa7   :  { %v40_v41 = vmax.f32 %v129_v36, -128.0  ;;  %v41_v42 = vmax.f32 %v130_v37, -128.0  ;;  %v65_v43 = vmul.f32 %v140_v38, %v51_v6  ;;  %v66_v44 = vmul.f32 %v140_v38, %v52_v9 }
  0xa8   :  { %v96_v45 = vmax.f32 %v133_v39, -128.0  ;;  %v97_v46 = vmax.f32 %v134_v40, -128.0 }
  0xa9   :  { %v42_v47 = vmin.f32 %v40_v41, 127.0  ;;  %v43_v48 = vmin.f32 %v41_v42, 127.0  ;;  %v131_v49 = vround.rtne.f32 %v65_v43  ;;  %v132_v50 = vround.rtne.f32 %v66_v44 }
  0xaa   :  { %v98_v51 = vmin.f32 %v96_v45, 127.0  ;;  %v99_v52 = vmin.f32 %v97_v46, 127.0 }
  0xab   :  { %v44_v53 = vpack.c.bf16 %v42_v47, %v42_v47  ;;  %v45_v54 = vpack.c.bf16 %v43_v48, %v43_v48  ;;  %v69_v55 = vmax.f32 %v131_v49, -128.0  ;;  %v70_v56 = vmax.f32 %v132_v50, -128.0 }
  0xac   :  { %v100_v57 = vpack.c.bf16 %v98_v51, %v98_v51  ;;  %v101_v58 = vpack.c.bf16 %v99_v52, %v99_v52 }
  0xad   :  { %47 = vst.msk [vmem:[%s252_s3] sm:$0xf] %vm46_vm5, %v44_v53  ;;  %48 = vst.msk [vmem:[%s252_s3 + $0x4] sm:$0xf] %vm46_vm5, %v45_v54  ;;  %v71_v59 = vmin.f32 %v69_v55, 127.0  ;;  %v72_v60 = vmin.f32 %v70_v56, 127.0 }
  0xae   :  { %102 = vst.msk [vmem:[%s253_s5] sm:$0xf] %vm46_vm5, %v100_v57  ;;  %103 = vst.msk [vmem:[%s253_s5 + $0x4] sm:$0xf] %vm46_vm5, %v101_v58 }
  0xaf   :  { %v73_v61 = vpack.c.bf16 %v71_v59, %v71_v59  ;;  %v74_v62 = vpack.c.bf16 %v72_v60, %v72_v60 }
  0xb1   :  { %75 = vst.msk [vmem:[%s254_s4] sm:$0xf] %vm46_vm5, %v73_v61  ;;  %76 = vst.msk [vmem:[%s254_s4 + $0x4] sm:$0xf] %vm46_vm5, %v74_v62 }

// kernel: multi_headed_attention.6
= control target key start
LH: loop header
LB: loop body
LE: loop exit
PB: predicated region body
PF: predicated region fallthrough
CT: control target
= control target key end

     0   :  { %14 = vsyncpa [#allocation3], 0  ;;  %s344_s0 = inlined_call_operand.vmem [shape: f32[2,8,32], index: 0, kind: input, shape index: {}]   ;;  %s345_s1 = inlined_call_operand.hbm [shape: f32[2,8,32], index: 1, kind: input, shape index: {}]   ;;  %s346_s2 = inlined_call_operand.hbm [shape: f32[2,8,32], index: 2, kind: input, shape index: {}]   ;;  %s347_s3 = inlined_call_operand.vmem [shape: bf16[2,8,32], index: 3, kind: output, shape index: {0}]   ;;  %s348_s4 = inlined_call_operand.vmem [shape: bf16[2,8,32], index: 4, kind: output, shape index: {1}]   ;;  %s349_s5 = inlined_call_operand.vmem [shape: bf16[2,8,32], index: 5, kind: output, shape index: {2}]   ;;  %s350_s6 = inlined_call_operand.vmem [shape: f32[8,1], index: 6, kind: output, shape index: {3}]   ;;  %s351_s7 = inlined_call_operand.vmem [shape: f32[8,1], index: 7, kind: output, shape index: {4}]   ;;  %s352_s8 = inlined_call_operand.vmem [shape: f32[8,1], index: 8, kind: output, shape index: {5}]  }
   0x1   :  { %15 = vsyncpa [#allocation5], 0  ;;  %s223_s27 = smov [#allocation2]   ;;  %s175_s9 = scalar_lea.hbm %s345_s1, 256 }
   0x2   :  { %s23_s28 = sshll.u32 %s223_s27, 4  ;;  %p176_p0 = scmp.ne.s32.totalorder %s345_s1, %s175_s9  ;;  %s24_s28 = int_to_ptr.vmem [resolvable:$true] %s23_s28 }
   0x3   :  { %p179_p1 = scmp.lt.u32.totalorder %s175_s9, %s345_s1 }
   0x5   :  { %p181_p2 = pnand %p179_p1, %p176_p0 }
   0x7   :  { %184 = shalt.err (!%p181_p2)
}
   0x8   :  { %s185_s14 = scalar_lea.vmem %s24_s28, 256  ;;  %p190_p4 = scmp.lt.s32.totalorder %s24_s28, %s24_s28 }
   0x9   :  { %p186_p3 = scmp.ne.s32.totalorder %s24_s28, %s185_s14  ;;  %p191_p5 = scmp.lt.s32.totalorder %s185_s14, %s185_s14 }
   0xb   :  { %p192_p6 = por %p191_p5, %p190_p4 }
   0xd   :  { %p193_p7 = pnand %p192_p6, %p186_p3 }
   0xf   :  { %196 = shalt.err (!%p193_p7)
}
  0x10   :  { %s224_s15 = smov 128   ;;  %s225_s16 = smov 8  }
  0x11   :  { %29 = dma.hbm_to_vmem [thread:$0]  %s345_s1, 256, %s24_s28, [#allocation3], %s224_s15, %s224_s15, %s225_s16  }
  0x12   :  { %s226_s19 = smov [#allocation4]   ;;  %s197_s23 = scalar_lea.hbm %s346_s2, 256 }
  0x13   :  { %s35_s20 = sshll.u32 %s226_s19, 4  ;;  %p198_p8 = scmp.ne.s32.totalorder %s346_s2, %s197_s23  ;;  %s36_s20 = int_to_ptr.vmem [resolvable:$true] %s35_s20 }
  0x14   :  { %p201_p9 = scmp.lt.u32.totalorder %s197_s23, %s346_s2 }
  0x16   :  { %p203_p10 = pnand %p201_p9, %p198_p8 }
  0x18   :  { %206 = shalt.err (!%p203_p10)
}
  0x19   :  { %s207_s29 = scalar_lea.vmem %s36_s20, 256  ;;  %p212_p12 = scmp.lt.s32.totalorder %s36_s20, %s36_s20 }
  0x1a   :  { %p208_p11 = scmp.ne.s32.totalorder %s36_s20, %s207_s29  ;;  %p213_p13 = scmp.lt.s32.totalorder %s207_s29, %s207_s29 }
  0x1c   :  { %p214_p0 = por %p213_p13, %p212_p12 }
  0x1e   :  { %p215_p1 = pnand %p214_p0, %p208_p11 }
  0x20   :  { %218 = shalt.err (!%p215_p1)
}
  0x21   :  { %41 = dma.hbm_to_vmem [thread:$0]  %s346_s2, 256, %s36_s20, [#allocation5], %s224_s15, %s224_s15, %s225_s16  }
  0x22   :  { %219 = dma.done.wait [#allocation3], 256  }
  0x23   :  { %220 = vsyncadd [#allocation3], 4294967040 }
  0x24   :  { %221 = dma.done.wait [#allocation5], 256  }
  0x25   :  { %222 = vsyncadd [#allocation5], 4294967040  ;;  %v48_v0 = vld [vmem:[%s344_s0] sm:$0xff]  ;;  %v49_v1 = vld [vmem:[%s344_s0 + $0x8] sm:$0xff]  ;;  %vm52_vm0 = vcmask 261120   ;;  %vm77_vm1 = vcmask 7168  }
  0x26   :  { %v106_v2 = vld [vmem:[#allocation4] sm:$0xff]  ;;  %v50_v3 = vand.u32 2147483647, %v48_v0  ;;  %v51_v4 = vand.u32 2147483647, %v49_v1  ;;  %v107_v5 = vld [vmem:[#allocation4 + $0x8] sm:$0xff] }
  0x27   :  { %v79_v6 = vld [vmem:[#allocation2] sm:$0xff]  ;;  %v108_v7 = vand.u32 2147483647, %v106_v2  ;;  %v109_v8 = vand.u32 2147483647, %v107_v5  ;;  %v80_v9 = vld [vmem:[#allocation2 + $0x8] sm:$0xff] }
  0x28   :  { %v53_v10 = vsel %vm52_vm0, %v50_v3, -inf  ;;  %v54_v11 = vsel %vm52_vm0, %v51_v4, -inf  ;;  %v81_v12 = vand.u32 2147483647, %v79_v6  ;;  %v82_v13 = vand.u32 2147483647, %v80_v9 }
  0x29   :  { %v55_v14 = vmax.f32 %v53_v10, %v54_v11  ;;  %v110_v15 = vsel %vm52_vm0, %v108_v7, -inf  ;;  %v111_v16 = vsel %vm52_vm0, %v109_v8, -inf  ;;  %vm74_vm5 = vcmask 257024  }
  0x2a   :  { %v112_v17 = vmax.f32 %v110_v15, %v111_v16  ;;  %v83_v18 = vsel %vm52_vm0, %v81_v12, -inf  ;;  %v84_v19 = vsel %vm52_vm0, %v82_v13, -inf }
  0x2b   :  { %56 = vmax.xlane.f32.xlu0 %v55_v14  ;;  %v85_v20 = vmax.f32 %v83_v18, %v84_v19 }
  0x2c   :  { %113 = vmax.xlane.f32.xlu1 %v112_v17 }
  0x2f   :  { %86 = vmax.xlane.f32.xlu0 %v85_v20 }
  0xb8   :  { %v57_v21 = vpop.xlane.xlu0 %56 }
  0xb9   :  { %vm58_vm2 = vcmp.gt.f32.partialorder %v57_v21, 0.0  ;;  %v60_v22 = vmul.f32 0.007874016, %v57_v21  ;;  %v114_v23 = vpop.xlane.xlu1 %113 }
  0xba   :  { %vm115_vm3 = vcmp.gt.f32.partialorder %v114_v23, 0.0  ;;  %v116_v24 = vmul.f32 0.007874016, %v114_v23 }
  0xbb   :  { %v61_v25 = vsel %vm58_vm2, %v60_v22, 1.0 }
  0xbc   :  { %169 = vrcp.f32 %v61_v25  ;;  %78 = vst.msk [vmem:[%s350_s6] sm:$0xff] %vm77_vm1, %v61_v25  ;;  %v117_v26 = vsel %vm115_vm3, %v116_v24, 1.0  ;;  %v87_v27 = vpop.xlane.xlu0 %86 }
  0xbd   :  { %171 = vrcp.f32 %v117_v26  ;;  %132 = vst.msk [vmem:[%s352_s8] sm:$0xff] %vm77_vm1, %v117_v26  ;;  %vm88_vm4 = vcmp.gt.f32.partialorder %v87_v27, 0.0  ;;  %v89_v28 = vmul.f32 0.007874016, %v87_v27 }
  0xbf   :  { %v90_v29 = vsel %vm88_vm4, %v89_v28, 1.0 }
  0xc0   :  { %173 = vrcp.f32 %v90_v29  ;;  %105 = vst.msk [vmem:[%s351_s7] sm:$0xff] %vm77_vm1, %v90_v29 }
  0xc6   :  { %v170_v30 = vpop.eup %169 }
  0xc7   :  { %v172_v31 = vpop.eup %171  ;;  %v64_v32 = vmul.f32 %v170_v30, %v48_v0  ;;  %v65_v33 = vmul.f32 %v170_v30, %v49_v1 }
  0xc8   :  { %v120_v34 = vmul.f32 %v172_v31, %v106_v2  ;;  %v121_v35 = vmul.f32 %v172_v31, %v107_v5 }
  0xc9   :  { %v159_v36 = vround.rtne.f32 %v64_v32  ;;  %v160_v37 = vround.rtne.f32 %v65_v33 }
  0xca   :  { %v174_v38 = vpop.eup %173  ;;  %v163_v39 = vround.rtne.f32 %v120_v34  ;;  %v164_v40 = vround.rtne.f32 %v121_v35 }
  0xcb   :  { %v68_v41 = vmax.f32 %v159_v36, -128.0  ;;  %v69_v42 = vmax.f32 %v160_v37, -128.0  ;;  %v93_v43 = vmul.f32 %v174_v38, %v79_v6  ;;  %v94_v44 = vmul.f32 %v174_v38, %v80_v9 }
  0xcc   :  { %v124_v45 = vmax.f32 %v163_v39, -128.0  ;;  %v125_v46 = vmax.f32 %v164_v40, -128.0 }
  0xcd   :  { %v70_v47 = vmin.f32 %v68_v41, 127.0  ;;  %v71_v48 = vmin.f32 %v69_v42, 127.0  ;;  %v161_v49 = vround.rtne.f32 %v93_v43  ;;  %v162_v50 = vround.rtne.f32 %v94_v44 }
  0xce   :  { %v126_v51 = vmin.f32 %v124_v45, 127.0  ;;  %v127_v52 = vmin.f32 %v125_v46, 127.0 }
  0xcf   :  { %v72_v53 = vpack.c.bf16 %v70_v47, %v70_v47  ;;  %v73_v54 = vpack.c.bf16 %v71_v48, %v71_v48  ;;  %v97_v55 = vmax.f32 %v161_v49, -128.0  ;;  %v98_v56 = vmax.f32 %v162_v50, -128.0 }
  0xd0   :  { %v128_v57 = vpack.c.bf16 %v126_v51, %v126_v51  ;;  %v129_v58 = vpack.c.bf16 %v127_v52, %v127_v52 }
  0xd1   :  { %75 = vst.msk [vmem:[%s347_s3] sm:$0xf] %vm74_vm5, %v72_v53  ;;  %76 = vst.msk [vmem:[%s347_s3 + $0x4] sm:$0xf] %vm74_vm5, %v73_v54  ;;  %v99_v59 = vmin.f32 %v97_v55, 127.0  ;;  %v100_v60 = vmin.f32 %v98_v56, 127.0 }
  0xd2   :  { %130 = vst.msk [vmem:[%s349_s5] sm:$0xf] %vm74_vm5, %v128_v57  ;;  %131 = vst.msk [vmem:[%s349_s5 + $0x4] sm:$0xf] %vm74_vm5, %v129_v58 }
  0xd3   :  { %v101_v61 = vpack.c.bf16 %v99_v59, %v99_v59  ;;  %v102_v62 = vpack.c.bf16 %v100_v60, %v100_v60 }
  0xd5   :  { %103 = vst.msk [vmem:[%s348_s4] sm:$0xf] %vm74_vm5, %v101_v61  ;;  %104 = vst.msk [vmem:[%s348_s4 + $0x4] sm:$0xf] %vm74_vm5, %v102_v62 }
  0xd6   :  { %157 = vsyncpa [#allocation3], 1 }
  0xd7   :  { %158 = vsyncpa [#allocation5], 1 }

// kernel: multi_headed_attention.7
= control target key start
LH: loop header
LB: loop body
LE: loop exit
PB: predicated region body
PF: predicated region fallthrough
CT: control target
= control target key end

     0   :  { %v375_v0 = vmov 0.0   ;;  %vm376_vm0 = vmmov 0   ;;  %v377_v4 = vmov 0   ;;  %vm68_vm1 = vcmask 261120   ;;  %s528_s6 = inlined_call_operand.vmem [shape: bf16[32,32], index: 6, kind: input, shape index: {}]   ;;  %s529_s7 = inlined_call_operand.vmem [shape: bf16[32,32], index: 7, kind: input, shape index: {}]   ;;  %s530_s0 = inlined_call_operand.vmem [shape: bf16[2,8,32], index: 0, kind: input, shape index: {}]   ;;  %s531_s8 = inlined_call_operand.vmem [shape: bf16[32,32], index: 8, kind: input, shape index: {}]   ;;  %s532_s1 = inlined_call_operand.vmem [shape: bf16[2,8,32], index: 1, kind: input, shape index: {}]   ;;  %s533_s3 = inlined_call_operand.vmem [shape: f32[8,1], index: 3, kind: input, shape index: {}]   ;;  %s534_s5 = inlined_call_operand.vmem [shape: f32[8,1], index: 5, kind: input, shape index: {}]   ;;  %s535_s2 = inlined_call_operand.vmem [shape: bf16[2,8,32], index: 2, kind: input, shape index: {}]   ;;  %s536_s4 = inlined_call_operand.vmem [shape: f32[8,1], index: 4, kind: input, shape index: {}]   ;;  %s537_s9 = inlined_call_operand.vmem [shape: f32[1,32], index: 9, kind: input, shape index: {}]   ;;  %s538_s10 = inlined_call_operand.vmem [shape: f32[1,32], index: 10, kind: input, shape index: {}]   ;;  %s539_s11 = inlined_call_operand.vmem [shape: f32[1,32], index: 11, kind: input, shape index: {}]   ;;  %s540_s12 = inlined_call_operand.vmem [shape: f32[2,8,32], index: 12, kind: output, shape index: {0}]   ;;  %s541_s13 = inlined_call_operand.vmem [shape: f32[2,8,32], index: 13, kind: output, shape index: {1}]   ;;  %s542_s14 = inlined_call_operand.vmem [shape: f32[2,8,32], index: 14, kind: output, shape index: {2}]  }
   0x1   :  { %337 = vmatprep.subr.bf16.mxu0 %v375_v0  ;;  %v366_v1 = vld [vmem:[%s528_s6] sm:$0xff]   ;;  %345 = vmatprep.subr.bf16.mxu1 %v375_v0  ;;  %v367_v2 = vld [vmem:[%s528_s6 + $0x8] sm:$0xff]  }
   0x2   :  { %341 = vmatprep.mubr.msk.bf16.mxu0 %vm376_vm0, %v375_v0  ;;  %349 = vmatprep.mubr.msk.bf16.mxu1 %vm376_vm0, %v375_v0  ;;  %v368_v3 = vld [vmem:[%s529_s7] sm:$0xff]   ;;  %v371_v6 = vld [vmem:[%s529_s7 + $0x8] sm:$0xff]  }
   0x3   :  { %338 = vmatpush3.bf16.msra.mxu0 %v366_v1  ;;  %364 = vset.pattern.permute.xlu0 %v377_v4  ;;  %v369_v5 = vld [vmem:[%s530_s0] sm:$0xff]   ;;  %v373_v11 = vld [vmem:[%s531_s8 + $0x8] sm:$0xff]  }
   0x4   :  { %339 = vmatprep.subr.bf16.mxu0 %v375_v0  ;;  %365 = vset.pattern.permute.xlu1 %v377_v4  ;;  %v370_v7 = vld [vmem:[%s531_s8] sm:$0xff]  }
   0x5   :  { %346 = vmatpush3.bf16.msra.mxu1 %v368_v3  ;;  %v372_v8 = vld [vmem:[%s532_s1] sm:$0xff]  }
   0x6   :  { %347 = vmatprep.subr.bf16.mxu1 %v375_v0  ;;  %v113_v9 = vld [vmem:[%s533_s3] sm:$0xff] }
   0x7   :  { %340 = vmatpush3.bf16.msra.mxu0 %v367_v2  ;;  %v283_v10 = vld [vmem:[%s534_s5] sm:$0xff]  ;;  %117 = vperm.xlu0 %364, %v113_v9  }
   0x8   :  { %353 = vmatprep.subr.bf16.mxu0 %v375_v0  ;;  %287 = vperm.xlu1 %365, %v283_v10   ;;  %v374_v12 = vld [vmem:[%s535_s2] sm:$0xff]  }
   0x9   :  { %348 = vmatpush3.bf16.msra.mxu1 %v371_v6  ;;  %v198_v13 = vld [vmem:[%s536_s4] sm:$0xff] }
   0xa   :  { %342 = vmatmul.mubr.msk.bf16.vlgmr.msra.gmra.mrb[0].mxu0 %vm68_vm1, %v369_v5  ;;  %v317_v15 = vld [vmem:[%s537_s9] ss:$0 sm:$0xff] }
   0xb   :  { %354 = vmatpush3.bf16.msra.mxu0 %v370_v7  ;;  %357 = vmatprep.mubr.msk.bf16.mxu0 %vm376_vm0, %v375_v0  ;;  %v322_v16 = vld [vmem:[%s538_s10] ss:$0 sm:$0xff] }
   0xc   :  { %355 = vmatprep.subr.bf16.mxu0 %v375_v0  ;;  %350 = vmatmul.mubr.msk.bf16.vlgmr.msra.gmra.mrb[0].mxu1 %vm68_vm1, %v372_v8  ;;  %v327_v26 = vld [vmem:[%s539_s11] ss:$0 sm:$0xff] }
   0xd   :  { %202 = vperm.xlu0 %364, %v198_v13  }
   0xf   :  { %356 = vmatpush3.bf16.msra.mxu0 %v373_v11 }
  0x12   :  { %358 = vmatmul.mubr.msk.bf16.vlgmr.msra.gmra.mrb[4].mxu0 %vm68_vm1, %v374_v12 }
  0x86   :  { %v118_v14 = vpop.permute.xlu0 %117 }
  0x87   :  { %v126_v18 = vmul.f32 %v317_v15, %v118_v14  ;;  %v288_v23 = vpop.permute.xlu1 %287 }
  0x88   :  { %v296_v32 = vmul.f32 %v327_v26, %v288_v23 }
  0x8c   :  { %v203_v17 = vpop.permute.xlu0 %202 }
  0x8d   :  { %v211_v19 = vmul.f32 %v322_v16, %v203_v17 }
  0xdd   :  { %v106_v20 = vpop.f32.mrb[0].mxu0 }
  0xde   :  { %v127_v21 = vmul.f32 %v126_v18, %v106_v20  ;;  %v343_v22 = vpop.f32.mrb[1].mxu0 }
  0xdf   :  { %v109_v24 = vpop.f32.mrb[2].mxu0  ;;  %v191_v25 = vpop.f32.mrb[0].mxu1 }
  0xe0   :  { %129 = vst.msk [vmem:[%s540_s12] sm:$0xff] %vm68_vm1, %v127_v21  ;;  %v128_v27 = vmul.f32 %v126_v18, %v109_v24  ;;  %v344_v28 = vpop.f32.mrb[3].mxu0  ;;  %v212_v29 = vmul.f32 %v211_v19, %v191_v25  ;;  %v351_v30 = vpop.f32.mrb[1].mxu1 }
  0xe1   :  { %v194_v31 = vpop.f32.mrb[2].mxu1 }
  0xe2   :  { %130 = vst.msk [vmem:[%s540_s12 + $0x8] sm:$0xff] %vm68_vm1, %v128_v27  ;;  %214 = vst.msk [vmem:[%s541_s13] sm:$0xff] %vm68_vm1, %v212_v29  ;;  %v213_v33 = vmul.f32 %v211_v19, %v194_v31  ;;  %v352_v34 = vpop.f32.mrb[3].mxu1 }
  0xe4   :  { %215 = vst.msk [vmem:[%s541_s13 + $0x8] sm:$0xff] %vm68_vm1, %v213_v33 }
  0xe5   :  { %v276_v35 = vpop.f32.mrb[4].mxu0 }
  0xe6   :  { %v297_v36 = vmul.f32 %v296_v32, %v276_v35  ;;  %v359_v37 = vpop.f32.mrb[5].mxu0 }
  0xe7   :  { %v279_v38 = vpop.f32.mrb[6].mxu0 }
  0xe8   :  { %299 = vst.msk [vmem:[%s542_s14] sm:$0xff] %vm68_vm1, %v297_v36  ;;  %v298_v39 = vmul.f32 %v296_v32, %v279_v38  ;;  %v360_v40 = vpop.f32.mrb[7].mxu0 }
  0xea   :  { %300 = vst.msk [vmem:[%s542_s14 + $0x8] sm:$0xff] %vm68_vm1, %v298_v39 }

// kernel: multi_headed_attention.9
= control target key start
LH: loop header
LB: loop body
LE: loop exit
PB: predicated region body
PF: predicated region fallthrough
CT: control target
= control target key end

     0   :  { %vm63_vm0 = vcmask 64512   ;;  %v1737_v0 = vmov 0.0   ;;  %vm1738_vm1 = vmmov 0   ;;  %v1740_v10 = vmov 0   ;;  %s1742_s29 = smov 104   ;;  %s1745_s12 = smov 24   ;;  %s2030_s2 = inlined_call_operand.vmem [shape: bf16[2,8,32], index: 2, kind: input, shape index: {}]   ;;  %s2031_s0 = inlined_call_operand.vmem [shape: bf16[2,8,32], index: 0, kind: input, shape index: {}]   ;;  %s2032_s1 = inlined_call_operand.vmem [shape: f32[8,1], index: 1, kind: input, shape index: {}]   ;;  %s2033_s3 = inlined_call_operand.vmem [shape: f32[8,1], index: 3, kind: input, shape index: {}]   ;;  %s2034_s5 = inlined_call_operand.vmem [shape: f32[8,1], index: 5, kind: input, shape index: {}]   ;;  %s2035_s4 = inlined_call_operand.vmem [shape: bf16[2,8,32], index: 4, kind: input, shape index: {}]   ;;  %s2036_s6 = inlined_call_operand.vmem [shape: f32[2,8,32], index: 6, kind: output, shape index: {}]  }
   0x1   :  { %1504 = vmatprep.subr.bf16.mxu0 %v1737_v0  ;;  %1510 = vmatprep.subr.bf16.mxu1 %v1737_v0  ;;  %v26_v1 = vld [vmem:[%s2030_s2] sm:$0xf]  ;;  %v27_v2 = vld [vmem:[%s2030_s2 + $0x4] sm:$0xf]  ;;  %s1739_s2 = smov 120   ;;  %v43_v33 = vlaneseq  ;;  %vm609_vm2 = vcmask 1043456  }
   0x2   :  { %v24_v3 = vld [vmem:[%s2031_s0] sm:$0xf]  ;;  %v68_v4 = vsel %vm63_vm0, %v26_v1, 0  ;;  %v1427_v5 = vcombine.low %v26_v1, %v26_v1  ;;  %v114_v6 = vsel %vm63_vm0, %v27_v2, 0  ;;  %1506 = vmatprep.mubr.msk.bf16.mxu0 %vm1738_vm1, %v1737_v0  ;;  %1512 = vmatprep.mubr.msk.bf16.mxu1 %vm1738_vm1, %v1737_v0  ;;  %v25_v7 = vld [vmem:[%s2031_s0 + $0x4] sm:$0xf]  ;;  %v1430_v9 = vcombine.low %v27_v2, %v27_v2 }
   0x3   :  { %1505 = vmatpush3.bf16.xpose.msra.mxu0 %v68_v4  ;;  %1511 = vmatpush3.bf16.xpose.msra.mxu1 %v114_v6  ;;  %v1426_v8 = vcombine.low %v24_v3, %v24_v3  ;;  %v1429_v11 = vcombine.low %v25_v7, %v25_v7  ;;  %s1741_s0 = smov 112   ;;  %v30_v12 = vld [vmem:[%s2032_s1] sm:$0xff]  ;;  %v44_v34 = vand.u32 127, %v43_v33  ;;  %v46_v35 = vshrl.u32 %v43_v33, 7 }
   0x4   :  { %189 = vrot.lane.b32.xlu0 %v1427_v5, %s1739_s2  ;;  %1698 = vset.pattern.permute.xlu1 %v1740_v10  ;;  %v31_v13 = vld [vmem:[%s2033_s3] sm:$0xff]  ;;  %v33_v14 = vmul.f32 0.35355338, %v30_v12  ;;  %vm1409_vm4 = vcmask 130048   ;;  %vm1412_vm5 = vcmask 195584   ;;  %vm1417_vm6 = vcmask 261120  }
   0x5   :  { %184 = vrot.lane.b32.xlu1 %v1426_v8, %s1739_s2  ;;  %1697 = vset.pattern.permute.xlu0 %v1740_v10  ;;  %v47_v36 = vsub.s32 %v44_v34, %v46_v35 }
   0x6   :  { %1516 = vmatprep.subr.bf16.mxu0 %v1737_v0  ;;  %1522 = vmatprep.subr.bf16.mxu1 %v1737_v0 }
   0x8   :  { %245 = vrot.lane.b32.xlu0 %v1430_v9, %s1739_s2 }
   0x9   :  { %240 = vrot.lane.b32.xlu1 %v1429_v11, %s1739_s2 }
   0xa   :  { %1507 = vmatmul.mubr.msk.bf16.vlgmr.msra.gmra.mrb[0].mxu0 %vm63_vm0, %v24_v3  ;;  %1513 = vmatmul.mubr.msk.bf16.vlgmr.msra.gmra.mrb[0].mxu1 %vm63_vm0, %v25_v7 }
   0xb   :  { %1518 = vmatprep.mubr.msk.bf16.mxu0 %vm1738_vm1, %v1737_v0  ;;  %1524 = vmatprep.mubr.msk.bf16.mxu1 %vm1738_vm1, %v1737_v0 }
   0xc   :  { %321 = vrot.lane.b32.xlu0 %v1427_v5, %s1741_s0 }
   0xd   :  { %371 = vrot.lane.b32.xlu1 %v1430_v9, %s1741_s0 }
  0x10   :  { %319 = vrot.lane.b32.xlu0 %v1426_v8, %s1741_s0 }
  0x11   :  { %369 = vrot.lane.b32.xlu1 %v1429_v11, %s1741_s0 }
  0x14   :  { %447 = vrot.lane.b32.xlu0 %v1427_v5, %s1742_s29 }
  0x15   :  { %497 = vrot.lane.b32.xlu1 %v1430_v9, %s1742_s29 }
  0x18   :  { %445 = vrot.lane.b32.xlu0 %v1426_v8, %s1742_s29 }
  0x19   :  { %495 = vrot.lane.b32.xlu1 %v1429_v11, %s1742_s29 }
  0x1c   :  { %41 = vperm.xlu0 %1697, %v31_v13  }
  0x1d   :  { %36 = vperm.xlu1 %1698, %v33_v14  }
  0x76   :  { %v190_v15 = vpop.permute.xlu0 %189 }
  0x77   :  { %v195_v16 = vsel %vm63_vm0, %v190_v15, 0  ;;  %v185_v17 = vpop.permute.xlu1 %184 }
  0x78   :  { %1517 = vmatpush3.bf16.xpose.msra.mxu0 %v195_v16 }
  0x79   :  { %1528 = vmatprep.subr.bf16.mxu0 %v1737_v0 }
  0x7a   :  { %v246_v18 = vpop.permute.xlu0 %245 }
  0x7b   :  { %v251_v19 = vsel %vm63_vm0, %v246_v18, 0  ;;  %v241_v20 = vpop.permute.xlu1 %240 }
  0x7c   :  { %1523 = vmatpush3.bf16.xpose.msra.mxu1 %v251_v19 }
  0x7d   :  { %1534 = vmatprep.subr.bf16.mxu1 %v1737_v0 }
  0x7e   :  { %v322_v21 = vpop.permute.xlu0 %321 }
  0x7f   :  { %v327_v22 = vsel %vm63_vm0, %v322_v21, 0  ;;  %1519 = vmatmul.mubr.msk.bf16.vlgmr.msra.gmra.mrb[4].mxu0 %vm63_vm0, %v185_v17  ;;  %v372_v23 = vpop.permute.xlu1 %371 }
  0x80   :  { %1529 = vmatpush3.bf16.xpose.msra.mxu0 %v327_v22  ;;  %1530 = vmatprep.mubr.msk.bf16.mxu0 %vm1738_vm1, %v1737_v0  ;;  %v377_v24 = vsel %vm63_vm0, %v372_v23, 0 }
  0x81   :  { %1540 = vmatprep.subr.bf16.mxu0 %v1737_v0 }
  0x82   :  { %v320_v25 = vpop.permute.xlu0 %319 }
  0x83   :  { %1525 = vmatmul.mubr.msk.bf16.vlgmr.msra.gmra.mrb[4].mxu1 %vm63_vm0, %v241_v20  ;;  %v370_v26 = vpop.permute.xlu1 %369 }
  0x84   :  { %1535 = vmatpush3.bf16.xpose.msra.mxu1 %v377_v24  ;;  %1536 = vmatprep.mubr.msk.bf16.mxu1 %vm1738_vm1, %v1737_v0 }
  0x85   :  { %1546 = vmatprep.subr.bf16.mxu1 %v1737_v0 }
  0x86   :  { %v448_v27 = vpop.permute.xlu0 %447 }
  0x87   :  { %v453_v28 = vsel %vm63_vm0, %v448_v27, 0  ;;  %1531 = vmatmul.mubr.msk.bf16.vlgmr.msra.gmra.mrb[8].mxu0 %vm63_vm0, %v320_v25  ;;  %v498_v29 = vpop.permute.xlu1 %497 }
  0x88   :  { %1541 = vmatpush3.bf16.xpose.msra.mxu0 %v453_v28  ;;  %1542 = vmatprep.mubr.msk.bf16.mxu0 %vm1738_vm1, %v1737_v0  ;;  %v503_v30 = vsel %vm63_vm0, %v498_v29, 0 }
  0x89   :  { %1552 = vmatprep.subr.bf16.mxu0 %v1737_v0 }
  0x8a   :  { %v446_v31 = vpop.permute.xlu0 %445 }
  0x8b   :  { %1537 = vmatmul.mubr.msk.bf16.vlgmr.msra.gmra.mrb[8].mxu1 %vm63_vm0, %v370_v26  ;;  %v496_v32 = vpop.permute.xlu1 %495 }
  0x8c   :  { %1547 = vmatpush3.bf16.xpose.msra.mxu1 %v503_v30  ;;  %1548 = vmatprep.mubr.msk.bf16.mxu1 %vm1738_vm1, %v1737_v0 }
  0x8d   :  { %1558 = vmatprep.subr.bf16.mxu1 %v1737_v0 }
  0x8f   :  { %1543 = vmatmul.mubr.msk.bf16.vlgmr.msra.gmra.mrb[12].mxu0 %vm63_vm0, %v446_v31 }
  0x90   :  { %1554 = vmatprep.mubr.msk.bf16.mxu0 %vm1738_vm1, %v1737_v0 }
  0x93   :  { %1549 = vmatmul.mubr.msk.bf16.vlgmr.msra.gmra.mrb[12].mxu1 %vm63_vm0, %v496_v32 }
  0x94   :  { %1560 = vmatprep.mubr.msk.bf16.mxu1 %vm1738_vm1, %v1737_v0 }
  0x9b   :  { %v42_v37 = vpop.permute.xlu0 %41 }
  0x9c   :  { %v48_v38 = vrot.slane %v42_v37, %v47_v36  ;;  %v37_v39 = vpop.permute.xlu1 %36 }
  0x9e   :  { %v62_v40 = vmul.f32 %v48_v38, %v37_v39 }
  0xdd   :  { %v104_v41 = vpop.f32.mrb[0].mxu0  ;;  %v150_v42 = vpop.f32.mrb[0].mxu1 }
  0xde   :  { %v156_v43 = vmul.f32 %v104_v41, %v62_v40  ;;  %v157_v44 = vmul.f32 %v150_v42, %v62_v40  ;;  %v1508_v45 = vpop.f32.mrb[1].mxu0  ;;  %v1514_v46 = vpop.f32.mrb[1].mxu1 }
  0xdf   :  { %v107_v47 = vpop.f32.mrb[2].mxu0  ;;  %v153_v48 = vpop.f32.mrb[2].mxu1 }
  0xe0   :  { %v161_v49 = vsel %vm63_vm0, %v157_v44, -inf  ;;  %v158_v50 = vsel %vm63_vm0, %v156_v43, -inf  ;;  %v1509_v51 = vpop.f32.mrb[3].mxu0  ;;  %v1515_v52 = vpop.f32.mrb[3].mxu1 }
  0xe1   :  { %162 = vmax.xlane.f32.xlu0 %v161_v49  ;;  %159 = vmax.xlane.f32.xlu1 %v158_v50 }
 0x152   :  { %v231_v53 = vpop.f32.mrb[4].mxu0 }
 0x153   :  { %v293_v54 = vmul.f32 %v231_v53, %v62_v40  ;;  %v1520_v55 = vpop.f32.mrb[5].mxu0 }
 0x154   :  { %v234_v56 = vpop.f32.mrb[6].mxu0 }
 0x155   :  { %v1521_v57 = vpop.f32.mrb[7].mxu0  ;;  %v295_v58 = vsel %vm63_vm0, %v293_v54, -inf }
 0x156   :  { %v287_v59 = vpop.f32.mrb[4].mxu1  ;;  %296 = vmax.xlane.f32.xlu0 %v295_v58 }
 0x157   :  { %v294_v60 = vmul.f32 %v287_v59, %v62_v40  ;;  %v1526_v61 = vpop.f32.mrb[5].mxu1 }
 0x158   :  { %v290_v62 = vpop.f32.mrb[6].mxu1 }
 0x159   :  { %v298_v63 = vsel %vm63_vm0, %v294_v60, -inf  ;;  %v1527_v1 = vpop.f32.mrb[7].mxu1 }
 0x15a   :  { %299 = vmax.xlane.f32.xlu1 %v298_v63  ;;  %v363_v2 = vpop.f32.mrb[8].mxu0 }
 0x15b   :  { %v419_v3 = vmul.f32 %v363_v2, %v62_v40  ;;  %v1532_v4 = vpop.f32.mrb[9].mxu0 }
 0x15c   :  { %v366_v5 = vpop.f32.mrb[10].mxu0 }
 0x15d   :  { %v421_v6 = vsel %vm63_vm0, %v419_v3, -inf  ;;  %v1533_v7 = vpop.f32.mrb[11].mxu0 }
 0x15e   :  { %v413_v8 = vpop.f32.mrb[8].mxu1  ;;  %422 = vmax.xlane.f32.xlu0 %v421_v6  ;;  %v1453_v6 = vld [vmem:[%s2035_s4] sm:$0xff]   ;;  %s1743_s4 = smov 8  }
 0x15f   :  { %v420_v9 = vmul.f32 %v413_v8, %v62_v40  ;;  %v1538_v10 = vpop.f32.mrb[9].mxu1 }
 0x160   :  { %v416_v11 = vpop.f32.mrb[10].mxu1  ;;  %v1455_v10 = vunpack.c.h.bf16 %v1453_v6 }
 0x161   :  { %v424_v12 = vsel %vm63_vm0, %v420_v9, -inf  ;;  %v1539_v13 = vpop.f32.mrb[11].mxu1 }
 0x162   :  { %425 = vmax.xlane.f32.xlu1 %v424_v12  ;;  %v489_v14 = vpop.f32.mrb[12].mxu0 }
 0x163   :  { %v545_v15 = vmul.f32 %v489_v14, %v62_v40  ;;  %v1544_v16 = vpop.f32.mrb[13].mxu0 }
 0x164   :  { %v492_v17 = vpop.f32.mrb[14].mxu0 }
 0x165   :  { %v547_v18 = vsel %vm63_vm0, %v545_v15, -inf  ;;  %v1545_v19 = vpop.f32.mrb[15].mxu0 }
 0x166   :  { %v539_v20 = vpop.f32.mrb[12].mxu1  ;;  %548 = vmax.xlane.f32.xlu0 %v547_v18 }
 0x167   :  { %v546_v21 = vmul.f32 %v539_v20, %v62_v40  ;;  %v1550_v22 = vpop.f32.mrb[13].mxu1 }
 0x168   :  { %v542_v23 = vpop.f32.mrb[14].mxu1 }
 0x169   :  { %v550_v24 = vsel %vm63_vm0, %v546_v21, -inf  ;;  %v1551_v25 = vpop.f32.mrb[15].mxu1 }
 0x16a   :  { %551 = vmax.xlane.f32.xlu1 %v550_v24 }
 0x16e   :  { %v163_v26 = vpop.xlane.xlu0 %162  ;;  %v160_v27 = vpop.xlane.xlu1 %159 }
 0x16f   :  { %v165_v28 = vsub.f32 %v157_v44, %v163_v26  ;;  %v164_v29 = vsub.f32 %v156_v43, %v160_v27 }
 0x171   :  { %v168_v30 = vmul.f32 1.442695, %v165_v28  ;;  %v166_v31 = vmul.f32 1.442695, %v164_v29 }
 0x173   :  { %1703 = vpow2.f32 %v168_v30 }
 0x174   :  { %1705 = vpow2.f32 %v166_v31 }
 0x17d   :  { %v1865_v32 = vpop.eup %1703 }
 0x17e   :  { %v1867_v33 = vpop.eup %1705  ;;  %v173_v34 = vsel %vm63_vm0, %v1865_v32, 0.0 }
 0x17f   :  { %174 = vadd.xlane.f32.xlu1 %v173_v34  ;;  %v170_v35 = vsel %vm63_vm0, %v1867_v33, 0.0 }
 0x180   :  { %171 = vadd.xlane.f32.xlu0 %v170_v35 }
 0x1e3   :  { %v297_v36 = vpop.xlane.xlu0 %296 }
 0x1e4   :  { %v301_v37 = vsub.f32 %v293_v54, %v297_v36 }
 0x1e6   :  { %v303_v38 = vmul.f32 1.442695, %v301_v37 }
 0x1e7   :  { %v300_v39 = vpop.xlane.xlu1 %299 }
 0x1e8   :  { %1707 = vpow2.f32 %v303_v38  ;;  %v302_v40 = vsub.f32 %v294_v60, %v300_v39 }
 0x1ea   :  { %v305_v41 = vmul.f32 1.442695, %v302_v40 }
 0x1eb   :  { %v423_v42 = vpop.xlane.xlu0 %422 }
 0x1ec   :  { %1709 = vpow2.f32 %v305_v41  ;;  %v427_v43 = vsub.f32 %v419_v3, %v423_v42  ;;  %v32_v3 = vld [vmem:[%s2034_s5] sm:$0xff]  ;;  %s1744_s5 = smov 16  }
 0x1ee   :  { %v429_v44 = vmul.f32 1.442695, %v427_v43 }
 0x1ef   :  { %v426_v45 = vpop.xlane.xlu1 %425 }
 0x1f0   :  { %1711 = vpow2.f32 %v429_v44  ;;  %v428_v46 = vsub.f32 %v420_v9, %v426_v45  ;;  %v1454_v9 = vunpack.c.l.bf16 %v1453_v6 }
 0x1f2   :  { %v1873_v47 = vpop.eup %1707  ;;  %v431_v48 = vmul.f32 1.442695, %v428_v46 }
 0x1f3   :  { %v549_v49 = vpop.xlane.xlu0 %548  ;;  %v307_v50 = vsel %vm63_vm0, %v1873_v47, 0.0 }
 0x1f4   :  { %1713 = vpow2.f32 %v431_v48  ;;  %v553_v51 = vsub.f32 %v545_v15, %v549_v49  ;;  %308 = vadd.xlane.f32.xlu0 %v307_v50 }
 0x1f6   :  { %v1877_v52 = vpop.eup %1709  ;;  %v555_v53 = vmul.f32 1.442695, %v553_v51 }
 0x1f7   :  { %v552_v54 = vpop.xlane.xlu1 %551  ;;  %v310_v55 = vsel %vm63_vm0, %v1877_v52, 0.0 }
 0x1f8   :  { %1715 = vpow2.f32 %v555_v53  ;;  %v554_v56 = vsub.f32 %v546_v21, %v552_v54  ;;  %311 = vadd.xlane.f32.xlu1 %v310_v55 }
 0x1fa   :  { %v1881_v57 = vpop.eup %1711  ;;  %v557_v58 = vmul.f32 1.442695, %v554_v56 }
 0x1fb   :  { %v433_v59 = vsel %vm63_vm0, %v1881_v57, 0.0 }
 0x1fc   :  { %1717 = vpow2.f32 %v557_v58  ;;  %434 = vadd.xlane.f32.xlu1 %v433_v59 }
 0x1fe   :  { %v1885_v60 = vpop.eup %1713 }
 0x1ff   :  { %v436_v61 = vsel %vm63_vm0, %v1885_v60, 0.0 }
 0x200   :  { %437 = vadd.xlane.f32.xlu1 %v436_v61 }
 0x202   :  { %v1889_v62 = vpop.eup %1715 }
 0x203   :  { %v559_v63 = vsel %vm63_vm0, %v1889_v62, 0.0 }
 0x204   :  { %560 = vadd.xlane.f32.xlu1 %v559_v63 }
 0x206   :  { %v1893_v1 = vpop.eup %1717 }
 0x207   :  { %v562_v2 = vsel %vm63_vm0, %v1893_v1, 0.0 }
 0x208   :  { %563 = vadd.xlane.f32.xlu1 %v562_v2 }
 0x20a   :  { %593 = vperm.xlu0 %1697, %v32_v3  }
 0x20c   :  { %v175_v4 = vpop.xlane.xlu1 %174 }
 0x20d   :  { %v172_v5 = vpop.xlane.xlu0 %171  ;;  %1719 = vrcp.f32 %v175_v4 }
 0x20e   :  { %1721 = vrcp.f32 %v172_v5 }
 0x217   :  { %v1720_v28 = vpop.eup %1719 }
 0x218   :  { %v1722_v29 = vpop.eup %1721 }
 0x219   :  { %v180_v37 = vmax.f32 %v1722_v29, %v1720_v28 }
 0x281   :  { %v309_v7 = vpop.xlane.xlu0 %308 }
 0x285   :  { %v312_v8 = vpop.xlane.xlu1 %311 }
 0x286   :  { %1723 = vrcp.f32 %v312_v8 }
 0x287   :  { %1725 = vrcp.f32 %v309_v7 }
 0x289   :  { %v435_v11 = vpop.xlane.xlu1 %434  ;;  %v594_v12 = vpop.permute.xlu0 %593 }
 0x28a   :  { %v596_v13 = vmul.f32 %v1454_v9, %v594_v12  ;;  %v597_v14 = vmul.f32 %v1455_v10, %v594_v12 }
 0x28c   :  { %v1903_v15 = vpack.c.bf16 %v596_v13, %v596_v13  ;;  %v1905_v16 = vpack.c.bf16 %v597_v14, %v597_v14 }
 0x28d   :  { %v438_v17 = vpop.xlane.xlu1 %437 }
 0x28e   :  { %v600_v18 = vunpack.c.l.bf16 %v1903_v15  ;;  %v601_v19 = vunpack.c.l.bf16 %v1905_v16  ;;  %1727 = vrcp.f32 %v438_v17  ;;  %v700_v9 = vsel %vm609_vm2, %v1903_v15, 0 }
 0x28f   :  { %1729 = vrcp.f32 %v435_v11 }
 0x290   :  { %v602_v20 = vsub.f32 %v596_v13, %v600_v18  ;;  %v603_v21 = vsub.f32 %v597_v14, %v601_v19  ;;  %v1724_v30 = vpop.eup %1723 }
 0x291   :  { %v561_v22 = vpop.xlane.xlu1 %560  ;;  %v1726_v31 = vpop.eup %1725 }
 0x292   :  { %v604_v23 = vpack.c.bf16 %v602_v20, %v602_v20  ;;  %v605_v24 = vpack.c.bf16 %v603_v21, %v603_v21  ;;  %1731 = vrcp.f32 %v561_v22  ;;  %v317_v35 = vmax.f32 %v1726_v31, %v1724_v30 }
 0x294   :  { %847 = vrot.lane.b32.xlu0 %v605_v24, %s1739_s2  ;;  %798 = vrot.lane.b32.xlu1 %v604_v23, %s1739_s2  ;;  %v611_v25 = vsel %vm609_vm2, %v604_v23, 0  ;;  %v657_v26 = vsel %vm609_vm2, %v605_v24, 0  ;;  %v318_v40 = vmax.f32 %v180_v37, %v317_v35 }
 0x295   :  { %v564_v27 = vpop.xlane.xlu1 %563  ;;  %1553 = vmatpush3.bf16.msra.mxu0 %v611_v25  ;;  %1559 = vmatpush3.bf16.msra.mxu1 %v657_v26 }
 0x296   :  { %1733 = vrcp.f32 %v564_v27  ;;  %1564 = vmatprep.subr.bf16.mxu0 %v1737_v0  ;;  %1570 = vmatprep.subr.bf16.mxu1 %v1737_v0 }
 0x298   :  { %896 = vrot.lane.b32.xlu0 %v1903_v15, %s1739_s2  ;;  %1047 = vrot.lane.b32.xlu1 %v605_v24, %s1741_s0  ;;  %v1728_v34 = vpop.eup %1727 }
 0x299   :  { %v1730_v36 = vpop.eup %1729 }
 0x29a   :  { %v443_v38 = vmax.f32 %v1730_v36, %v1728_v34 }
 0x29c   :  { %942 = vrot.lane.b32.xlu0 %v1905_v16, %s1739_s2  ;;  %1140 = vrot.lane.b32.xlu1 %v1905_v16, %s1741_s0  ;;  %v1732_v39 = vpop.eup %1731  ;;  %v444_v42 = vmax.f32 %v318_v40, %v443_v38 }
 0x2a0   :  { %v1734_v41 = vpop.eup %1733  ;;  %999 = vrot.lane.b32.xlu0 %v604_v23, %s1741_s0  ;;  %1245 = vrot.lane.b32.xlu1 %v605_v24, %s1742_s29 }
 0x2a1   :  { %v569_v43 = vmax.f32 %v1732_v39, %v1734_v41 }
 0x2a3   :  { %v570_v44 = vmax.f32 %v444_v42, %v569_v43 }
 0x2a4   :  { %1095 = vrot.lane.b32.xlu0 %v1903_v15, %s1741_s0  ;;  %1338 = vrot.lane.b32.xlu1 %v1905_v16, %s1742_s29 }
 0x2a5   :  { %vm571_vm3 = vcmp.gt.f32.partialorder %v570_v44, 0.0  ;;  %v573_v45 = vmul.f32 0.007874016, %v570_v44 }
 0x2a7   :  { %v1928_v46 = vsel %vm571_vm3, %v573_v45, 1.0 }
 0x2a8   :  { %1735 = vrcp.f32 %v1928_v46  ;;  %1197 = vrot.lane.b32.xlu0 %v604_v23, %s1742_s29 }
 0x2ac   :  { %1293 = vrot.lane.b32.xlu0 %v1903_v15, %s1742_s29 }
 0x2b2   :  { %v1736_v48 = vpop.eup %1735 }
 0x2b3   :  { %v1934_v49 = vmul.f32 %v1736_v48, %v1734_v41  ;;  %v577_v50 = vmul.f32 %v1736_v48, %v1722_v29  ;;  %v578_v51 = vmul.f32 %v1736_v48, %v1720_v28  ;;  %v785_v53 = vmul.f32 %v1736_v48, %v1726_v31 }
 0x2b4   :  { %v786_v54 = vmul.f32 %v1736_v48, %v1724_v30  ;;  %v987_v55 = vmul.f32 %v1736_v48, %v1730_v36  ;;  %v988_v56 = vmul.f32 %v1736_v48, %v1728_v34  ;;  %v1936_v58 = vmul.f32 %v1736_v48, %v1732_v39 }
 0x2b5   :  { %v579_v59 = vmul.f32 %v1867_v33, %v577_v50  ;;  %v580_v61 = vmul.f32 %v1865_v32, %v578_v51  ;;  %v743_v33 = vsel %vm609_vm2, %v1905_v16, 0  ;;  %v787_v32 = vmul.f32 %v1873_v47, %v785_v53 }
 0x2b6   :  { %v788_v10 = vmul.f32 %v1877_v52, %v786_v54  ;;  %v989_v23 = vmul.f32 %v1881_v57, %v987_v55  ;;  %v990_v24 = vmul.f32 %v1885_v60, %v988_v56  ;;  %v1188_v43 = vmul.f32 %v1893_v1, %v1934_v49 }
 0x2b7   :  { %v1680_v63 = vround.rtne.f32 %v579_v59  ;;  %v1681_v2 = vround.rtne.f32 %v580_v61  ;;  %v1682_v11 = vround.rtne.f32 %v787_v32  ;;  %v1187_v44 = vmul.f32 %v1889_v62, %v1936_v58 }
 0x2b8   :  { %v1683_v12 = vround.rtne.f32 %v788_v10  ;;  %v1684_v27 = vround.rtne.f32 %v989_v23  ;;  %v1685_v28 = vround.rtne.f32 %v990_v24  ;;  %v1687_v48 = vround.rtne.f32 %v1188_v43 }
 0x2b9   :  { %v583_v3 = vmax.f32 %v1680_v63, -128.0  ;;  %v584_v4 = vmax.f32 %v1681_v2, -128.0  ;;  %v791_v13 = vmax.f32 %v1682_v11, -128.0  ;;  %v1686_v45 = vround.rtne.f32 %v1187_v44 }
 0x2ba   :  { %v792_v14 = vmax.f32 %v1683_v12, -128.0  ;;  %v993_v31 = vmax.f32 %v1684_v27, -128.0  ;;  %v994_v34 = vmax.f32 %v1685_v28, -128.0  ;;  %v1192_v54 = vmax.f32 %v1687_v48, -128.0 }
 0x2bb   :  { %v585_v5 = vmin.f32 %v583_v3, 127.0  ;;  %v586_v6 = vmin.f32 %v584_v4, 127.0  ;;  %v793_v15 = vmin.f32 %v791_v13, 127.0  ;;  %v1191_v53 = vmax.f32 %v1686_v45, -128.0 }
 0x2bc   :  { %v794_v16 = vmin.f32 %v792_v14, 127.0  ;;  %v995_v57 = vmin.f32 %v993_v31, 127.0  ;;  %v996_v60 = vmin.f32 %v994_v34, 127.0  ;;  %v1194_v55 = vmin.f32 %v1192_v54, 127.0 }
 0x2bd   :  { %v587_v7 = vpack.c.bf16 %v585_v5, %v585_v5  ;;  %v588_v8 = vpack.c.bf16 %v586_v6, %v586_v6  ;;  %v795_v21 = vpack.c.bf16 %v793_v15, %v793_v15  ;;  %v1193_v62 = vmin.f32 %v1191_v53, 127.0 }
 0x2be   :  { %v796_v22 = vpack.c.bf16 %v794_v16, %v794_v16  ;;  %v997_v39 = vpack.c.bf16 %v995_v57, %v995_v57  ;;  %v998_v40 = vpack.c.bf16 %v996_v60, %v996_v60  ;;  %v1196_v61 = vpack.c.bf16 %v1194_v55, %v1194_v55 }
 0x2bf   :  { %1555 = vmatmul.mubr.msk.bf16.vlgmr.msra.gmra.mrb[16].mxu0 %vm63_vm0, %v587_v7  ;;  %1561 = vmatmul.mubr.msk.bf16.vlgmr.msra.gmra.mrb[16].mxu1 %vm63_vm0, %v588_v8  ;;  %v1195_v59 = vpack.c.bf16 %v1193_v62, %v1193_v62 }
 0x2c0   :  { %1565 = vmatpush3.bf16.msra.mxu0 %v700_v9  ;;  %1571 = vmatpush3.bf16.msra.mxu1 %v743_v33 }
 0x2c1   :  { %1566 = vmatprep.mubr.msk.bf16.mxu0 %vm1738_vm1, %v1737_v0  ;;  %1572 = vmatprep.mubr.msk.bf16.mxu1 %vm1738_vm1, %v1737_v0 }
 0x2c2   :  { %1576 = vmatprep.subr.bf16.mxu0 %v1737_v0  ;;  %1582 = vmatprep.subr.bf16.mxu1 %v1737_v0 }
 0x2cb   :  { %1567 = vmatmul.mubr.msk.bf16.vlgmr.msra.gmra.mrb[16].mxu0 %vm63_vm0, %v587_v7  ;;  %1573 = vmatmul.mubr.msk.bf16.vlgmr.msra.gmra.mrb[16].mxu1 %vm63_vm0, %v588_v8 }
 0x2cc   :  { %1584 = vmatprep.mubr.msk.bf16.mxu1 %vm1738_vm1, %v1737_v0  ;;  %1578 = vmatprep.mubr.msk.bf16.mxu0 %vm1738_vm1, %v1737_v0 }
 0x306   :  { %v848_v17 = vpop.permute.xlu0 %847  ;;  %v799_v18 = vpop.permute.xlu1 %798 }
 0x307   :  { %v853_v19 = vsel %vm609_vm2, %v848_v17, 0  ;;  %v804_v20 = vsel %vm609_vm2, %v799_v18, 0 }
 0x308   :  { %1577 = vmatpush3.bf16.msra.mxu0 %v804_v20  ;;  %1583 = vmatpush3.bf16.msra.mxu1 %v853_v19 }
 0x309   :  { %1588 = vmatprep.subr.bf16.mxu0 %v1737_v0  ;;  %1594 = vmatprep.subr.bf16.mxu1 %v1737_v0 }
 0x30a   :  { %v897_v47 = vpop.permute.xlu0 %896  ;;  %v1048_v29 = vpop.permute.xlu1 %1047 }
 0x30b   :  { %v899_v52 = vsel %vm609_vm2, %v897_v47, 0  ;;  %1579 = vmatmul.mubr.msk.bf16.vlgmr.msra.gmra.mrb[20].mxu0 %vm63_vm0, %v795_v21  ;;  %1585 = vmatmul.mubr.msk.bf16.vlgmr.msra.gmra.mrb[20].mxu1 %vm63_vm0, %v796_v22  ;;  %v1053_v35 = vsel %vm609_vm2, %v1048_v29, 0 }
 0x30c   :  { %1589 = vmatpush3.bf16.msra.mxu0 %v899_v52  ;;  %1596 = vmatprep.mubr.msk.bf16.mxu1 %vm1738_vm1, %v1737_v0 }
 0x30d   :  { %1590 = vmatprep.mubr.msk.bf16.mxu0 %vm1738_vm1, %v1737_v0  ;;  %1600 = vmatprep.subr.bf16.mxu0 %v1737_v0 }
 0x30e   :  { %v943_v25 = vpop.permute.xlu0 %942  ;;  %v1141_v37 = vpop.permute.xlu1 %1140 }
 0x30f   :  { %v945_v26 = vsel %vm609_vm2, %v943_v25, 0  ;;  %v1143_v41 = vsel %vm609_vm2, %v1141_v37, 0 }
 0x310   :  { %1595 = vmatpush3.bf16.msra.mxu1 %v945_v26 }
 0x311   :  { %1606 = vmatprep.subr.bf16.mxu1 %v1737_v0 }
 0x312   :  { %v1000_v30 = vpop.permute.xlu0 %999  ;;  %v1246_v50 = vpop.permute.xlu1 %1245 }
 0x313   :  { %v1005_v36 = vsel %vm609_vm2, %v1000_v30, 0  ;;  %v1251_v1 = vsel %vm609_vm2, %v1246_v50, 0 }
 0x316   :  { %v1096_v38 = vpop.permute.xlu0 %1095  ;;  %v1339_v56 = vpop.permute.xlu1 %1338 }
 0x317   :  { %1591 = vmatmul.mubr.msk.bf16.vlgmr.msra.gmra.mrb[20].mxu0 %vm63_vm0, %v795_v21  ;;  %1597 = vmatmul.mubr.msk.bf16.vlgmr.msra.gmra.mrb[20].mxu1 %vm63_vm0, %v796_v22  ;;  %v1098_v42 = vsel %vm609_vm2, %v1096_v38, 0  ;;  %v1341_v63 = vsel %vm609_vm2, %v1339_v56, 0 }
 0x318   :  { %1601 = vmatpush3.bf16.msra.mxu0 %v1005_v36  ;;  %1607 = vmatpush3.bf16.msra.mxu1 %v1053_v35 }
 0x319   :  { %1608 = vmatprep.mubr.msk.bf16.mxu1 %vm1738_vm1, %v1737_v0  ;;  %1602 = vmatprep.mubr.msk.bf16.mxu0 %vm1738_vm1, %v1737_v0 }
 0x31a   :  { %1612 = vmatprep.subr.bf16.mxu0 %v1737_v0  ;;  %1618 = vmatprep.subr.bf16.mxu1 %v1737_v0  ;;  %v1198_v51 = vpop.permute.xlu0 %1197 }
 0x31b   :  { %v1203_v49 = vsel %vm609_vm2, %v1198_v51, 0 }
 0x31e   :  { %v1294_v58 = vpop.permute.xlu0 %1293 }
 0x31f   :  { %1603 = vmatmul.mubr.msk.bf16.vlgmr.msra.gmra.mrb[24].mxu0 %vm63_vm0, %v997_v39  ;;  %1609 = vmatmul.mubr.msk.bf16.vlgmr.msra.gmra.mrb[24].mxu1 %vm63_vm0, %v998_v40  ;;  %v1296_v2 = vsel %vm609_vm2, %v1294_v58, 0 }
 0x320   :  { %1613 = vmatpush3.bf16.msra.mxu0 %v1098_v42  ;;  %1619 = vmatpush3.bf16.msra.mxu1 %v1143_v41 }
 0x321   :  { %1614 = vmatprep.mubr.msk.bf16.mxu0 %vm1738_vm1, %v1737_v0  ;;  %1620 = vmatprep.mubr.msk.bf16.mxu1 %vm1738_vm1, %v1737_v0 }
 0x322   :  { %1624 = vmatprep.subr.bf16.mxu0 %v1737_v0  ;;  %1630 = vmatprep.subr.bf16.mxu1 %v1737_v0 }
 0x32b   :  { %1615 = vmatmul.mubr.msk.bf16.vlgmr.msra.gmra.mrb[24].mxu0 %vm63_vm0, %v997_v39  ;;  %1621 = vmatmul.mubr.msk.bf16.vlgmr.msra.gmra.mrb[24].mxu1 %vm63_vm0, %v998_v40 }
 0x32c   :  { %1625 = vmatpush3.bf16.msra.mxu0 %v1203_v49  ;;  %1631 = vmatpush3.bf16.msra.mxu1 %v1251_v1 }
 0x32d   :  { %1626 = vmatprep.mubr.msk.bf16.mxu0 %vm1738_vm1, %v1737_v0  ;;  %1632 = vmatprep.mubr.msk.bf16.mxu1 %vm1738_vm1, %v1737_v0 }
 0x32e   :  { %1636 = vmatprep.subr.bf16.mxu0 %v1737_v0  ;;  %1642 = vmatprep.subr.bf16.mxu1 %v1737_v0 }
 0x333   :  { %1627 = vmatmul.mubr.msk.bf16.vlgmr.msra.gmra.mrb[28].mxu0 %vm63_vm0, %v1195_v59  ;;  %1633 = vmatmul.mubr.msk.bf16.vlgmr.msra.gmra.mrb[28].mxu1 %vm63_vm0, %v1196_v61 }
 0x334   :  { %1637 = vmatpush3.bf16.msra.mxu0 %v1296_v2  ;;  %1643 = vmatpush3.bf16.msra.mxu1 %v1341_v63 }
 0x335   :  { %1638 = vmatprep.mubr.msk.bf16.mxu0 %vm1738_vm1, %v1737_v0  ;;  %1644 = vmatprep.mubr.msk.bf16.mxu1 %vm1738_vm1, %v1737_v0 }
 0x33f   :  { %1639 = vmatmul.mubr.msk.bf16.vlgmr.msra.gmra.mrb[28].mxu0 %vm63_vm0, %v1195_v59  ;;  %1645 = vmatmul.mubr.msk.bf16.vlgmr.msra.gmra.mrb[28].mxu1 %vm63_vm0, %v1196_v61 }
 0x39e   :  { %v736_v3 = vpop.f32.mrb[16].mxu0  ;;  %v779_v4 = vpop.f32.mrb[16].mxu1 }
 0x39f   :  { %v1568_v5 = vpop.f32.mrb[17].mxu0  ;;  %v1574_v6 = vpop.f32.mrb[17].mxu1 }
 0x3a0   :  { %v739_v7 = vpop.f32.mrb[18].mxu0  ;;  %v782_v8 = vpop.f32.mrb[18].mxu1 }
 0x3a1   :  { %v1569_v9 = vpop.f32.mrb[19].mxu0  ;;  %v1575_v33 = vpop.f32.mrb[19].mxu1 }
 0x3ea   :  { %v935_v32 = vpop.f32.mrb[20].mxu0  ;;  %v981_v10 = vpop.f32.mrb[20].mxu1 }
 0x3eb   :  { %v1598_v11 = vpop.f32.mrb[21].mxu1  ;;  %1387 = vrot.lane.b32.xlu1 %v981_v10, %s1743_s4  ;;  %1385 = vrot.lane.b32.xlu0 %v935_v32, %s1743_s4  ;;  %v1592_v12 = vpop.f32.mrb[21].mxu0 }
 0x3ec   :  { %v938_v0 = vpop.f32.mrb[22].mxu0  ;;  %v984_v13 = vpop.f32.mrb[22].mxu1 }
 0x3ed   :  { %v1593_v14 = vpop.f32.mrb[23].mxu0  ;;  %v1599_v15 = vpop.f32.mrb[23].mxu1 }
 0x3fe   :  { %v1134_v16 = vpop.f32.mrb[24].mxu0  ;;  %v1179_v17 = vpop.f32.mrb[24].mxu1 }
 0x3ff   :  { %1395 = vrot.lane.b32.xlu1 %v1179_v17, %s1744_s5  ;;  %v1622_v18 = vpop.f32.mrb[25].mxu1  ;;  %1393 = vrot.lane.b32.xlu0 %v1134_v16, %s1744_s5  ;;  %v1616_v19 = vpop.f32.mrb[25].mxu0 }
 0x400   :  { %v1137_v20 = vpop.f32.mrb[26].mxu0  ;;  %v1182_v21 = vpop.f32.mrb[26].mxu1 }
 0x401   :  { %v1617_v22 = vpop.f32.mrb[27].mxu0  ;;  %v1623_v47 = vpop.f32.mrb[27].mxu1 }
 0x412   :  { %v1332_v52 = vpop.f32.mrb[28].mxu0  ;;  %v1377_v23 = vpop.f32.mrb[28].mxu1 }
 0x413   :  { %1403 = vrot.lane.b32.xlu1 %v1377_v23, %s1745_s12  ;;  %v1646_v24 = vpop.f32.mrb[29].mxu1  ;;  %1401 = vrot.lane.b32.xlu0 %v1332_v52, %s1745_s12  ;;  %v1640_v25 = vpop.f32.mrb[29].mxu0 }
 0x414   :  { %v1335_v26 = vpop.f32.mrb[30].mxu0  ;;  %v1380_v27 = vpop.f32.mrb[30].mxu1 }
 0x415   :  { %v1641_v28 = vpop.f32.mrb[31].mxu0  ;;  %v1647_v29 = vpop.f32.mrb[31].mxu1 }
 0x45d   :  { %v1388_v30 = vpop.permute.xlu1 %1387  ;;  %v1386_v31 = vpop.permute.xlu0 %1385 }
 0x45e   :  { %v1408_v36 = vsel %vm63_vm0, %v779_v4, %v1388_v30  ;;  %v1407_v57 = vsel %vm63_vm0, %v736_v3, %v1386_v31 }
 0x471   :  { %v1396_v34 = vpop.permute.xlu1 %1395  ;;  %v1394_v35 = vpop.permute.xlu0 %1393 }
 0x472   :  { %v1411_v60 = vsel %vm1409_vm4, %v1408_v36, %v1396_v34  ;;  %v1410_v37 = vsel %vm1409_vm4, %v1407_v57, %v1394_v35 }
 0x485   :  { %v1404_v38 = vpop.permute.xlu1 %1403  ;;  %v1402_v39 = vpop.permute.xlu0 %1401 }
 0x486   :  { %v1414_v40 = vsel %vm1412_vm5, %v1411_v60, %v1404_v38  ;;  %v1413_v41 = vsel %vm1412_vm5, %v1410_v37, %v1402_v39 }
 0x487   :  { %v1416_v42 = vmul.f32 %v1414_v40, %v1928_v46  ;;  %v1415_v43 = vmul.f32 %v1413_v41, %v1928_v46 }
 0x489   :  { %1419 = vst.msk [vmem:[%s2036_s6 + $0x8] sm:$0xff] %vm1417_vm6, %v1416_v42  ;;  %1418 = vst.msk [vmem:[%s2036_s6] sm:$0xff] %vm1417_vm6, %v1415_v43 }

// kernel: multi_headed_attention.10
= control target key start
LH: loop header
LB: loop body
LE: loop exit
PB: predicated region body
PF: predicated region fallthrough
CT: control target
= control target key end

     0   :  { %vm14_vm0 = vcmask 261120   ;;  %vm39_vm2 = vcmask 7168   ;;  %vm36_vm3 = vcmask 257024   ;;  %s83_s0 = inlined_call_operand.vmem [shape: f32[2,8,32], index: 0, kind: input, shape index: {}]   ;;  %s84_s2 = inlined_call_operand.vmem [shape: f32[8,1], index: 2, kind: output, shape index: {1}]   ;;  %s85_s1 = inlined_call_operand.vmem [shape: bf16[2,8,32], index: 1, kind: output, shape index: {0}]  }
   0x1   :  { %v10_v0 = vld [vmem:[%s83_s0] sm:$0xff]  ;;  %v11_v1 = vld [vmem:[%s83_s0 + $0x8] sm:$0xff] }
   0x2   :  { %v12_v2 = vand.u32 2147483647, %v10_v0  ;;  %v13_v3 = vand.u32 2147483647, %v11_v1 }
   0x4   :  { %v15_v4 = vsel %vm14_vm0, %v12_v2, -inf  ;;  %v16_v5 = vsel %vm14_vm0, %v13_v3, -inf }
   0x5   :  { %v17_v6 = vmax.f32 %v15_v4, %v16_v5 }
   0x7   :  { %18 = vmax.xlane.f32.xlu0 %v17_v6 }
  0x94   :  { %v19_v7 = vpop.xlane.xlu0 %18 }
  0x95   :  { %vm20_vm1 = vcmp.gt.f32.partialorder %v19_v7, 0.0  ;;  %v22_v8 = vmul.f32 0.007874016, %v19_v7 }
  0x97   :  { %v23_v9 = vsel %vm20_vm1, %v22_v8, 1.0 }
  0x98   :  { %51 = vrcp.f32 %v23_v9  ;;  %40 = vst.msk [vmem:[%s84_s2] sm:$0xff] %vm39_vm2, %v23_v9 }
  0xa2   :  { %v52_v10 = vpop.eup %51 }
  0xa3   :  { %v26_v11 = vmul.f32 %v52_v10, %v10_v0  ;;  %v27_v12 = vmul.f32 %v52_v10, %v11_v1 }
  0xa5   :  { %v49_v13 = vround.rtne.f32 %v26_v11  ;;  %v50_v14 = vround.rtne.f32 %v27_v12 }
  0xa7   :  { %v30_v15 = vmax.f32 %v49_v13, -128.0  ;;  %v31_v16 = vmax.f32 %v50_v14, -128.0 }
  0xa9   :  { %v32_v17 = vmin.f32 %v30_v15, 127.0  ;;  %v33_v18 = vmin.f32 %v31_v16, 127.0 }
  0xab   :  { %v34_v19 = vpack.c.bf16 %v32_v17, %v32_v17  ;;  %v35_v20 = vpack.c.bf16 %v33_v18, %v33_v18 }
  0xad   :  { %37 = vst.msk [vmem:[%s85_s1] sm:$0xf] %vm36_vm3, %v34_v19  ;;  %38 = vst.msk [vmem:[%s85_s1 + $0x4] sm:$0xf] %vm36_vm3, %v35_v20 }

// kernel: multi_headed_attention.11
= control target key start
LH: loop header
LB: loop body
LE: loop exit
PB: predicated region body
PF: predicated region fallthrough
CT: control target
= control target key end

     0   :  { %v171_v1 = vmov 0.0   ;;  %vm172_vm0 = vmmov 0   ;;  %s229_s0 = inlined_call_operand.vmem [shape: bf16[2,8,32], index: 0, kind: input, shape index: {}]   ;;  %s230_s1 = inlined_call_operand.vmem [shape: f32[8,1], index: 1, kind: input, shape index: {}]   ;;  %s231_s2 = inlined_call_operand.vmem [shape: bf16[32,32], index: 2, kind: input, shape index: {}]   ;;  %s232_s3 = inlined_call_operand.vmem [shape: f32[1,32], index: 3, kind: input, shape index: {}]   ;;  %s233_s4 = inlined_call_operand.hbm [shape: f32[2,8,32], index: 4, kind: output, shape index: {}]  }
   0x1   :  { %v144_v0 = vld [vmem:[%s231_s2] sm:$0xff]   ;;  %129 = vmatprep.subr.bf16.mxu0 %v171_v1  ;;  %v145_v2 = vld [vmem:[%s231_s2 + $0x8] sm:$0xff]   ;;  %133 = vmatprep.mubr.msk.bf16.mxu0 %vm172_vm0, %v171_v1 }
   0x2   :  { %130 = vmatpush3.bf16.msra.mxu0 %v144_v0  ;;  %v87_v3 = vld [vmem:[%s230_s1] sm:$0xff] }
   0x3   :  { %131 = vmatprep.subr.bf16.mxu0 %v171_v1 }
   0x4   :  { %9 = vsyncpa [#allocation3], 0  ;;  %v173_v4 = vmov 0   ;;  %v146_v5 = vld [vmem:[%s229_s0] sm:$0xff]   ;;  %vm42_vm1 = vcmask 261120   ;;  %s174_s24 = smov [#allocation2]  }
   0x5   :  { %143 = vset.pattern.permute.xlu0 %v173_v4  ;;  %v125_v6 = vld [vmem:[%s232_s3] ss:$0 sm:$0xff]  ;;  %s110_s25 = sshll.u32 %s174_s24, 4  ;;  %s111_s25 = int_to_ptr.vmem [resolvable:$true] %s110_s25 }
   0x6   :  { %91 = vperm.xlu0 %143, %v87_v3   ;;  %132 = vmatpush3.bf16.msra.mxu0 %v145_v2  ;;  %s147_s0 = scalar_lea.vmem %s111_s25, 256  ;;  %p152_p1 = scmp.lt.s32.totalorder %s111_s25, %s111_s25 }
   0x7   :  { %p148_p0 = scmp.ne.s32.totalorder %s111_s25, %s147_s0  ;;  %p153_p2 = scmp.lt.s32.totalorder %s147_s0, %s147_s0 }
   0x9   :  { %134 = vmatmul.mubr.msk.bf16.vlgmr.msra.gmra.mrb[0].mxu0 %vm42_vm1, %v146_v5  ;;  %p154_p3 = por %p153_p2, %p152_p1 }
   0xb   :  { %p155_p4 = pnand %p154_p3, %p148_p0 }
  0x85   :  { %v92_v7 = vpop.permute.xlu0 %91 }
  0x86   :  { %v100_v8 = vmul.f32 %v125_v6, %v92_v7 }
  0xdc   :  { %v80_v9 = vpop.f32.mrb[0].mxu0 }
  0xdd   :  { %v101_v10 = vmul.f32 %v100_v8, %v80_v9  ;;  %v135_v11 = vpop.f32.mrb[1].mxu0 }
  0xde   :  { %v83_v12 = vpop.f32.mrb[2].mxu0 }
  0xdf   :  { %103 = vst.msk [vmem:[#allocation2] sm:$0xff] %vm42_vm1, %v101_v10  ;;  %v102_v13 = vmul.f32 %v100_v8, %v83_v12  ;;  %v136_v14 = vpop.f32.mrb[3].mxu0 }
  0xe1   :  { %104 = vst.msk [vmem:[#allocation2 + $0x8] sm:$0xff] %vm42_vm1, %v102_v13 }
  0xe2   :  { %158 = shalt.err (!%p155_p4)
}
  0xe3   :  { %s159_s26 = scalar_lea.hbm %s233_s4, 256 }
  0xe4   :  { %p160_p5 = scmp.ne.s32.totalorder %s233_s4, %s159_s26  ;;  %p163_p6 = scmp.lt.u32.totalorder %s159_s26, %s233_s4 }
  0xe6   :  { %p165_p7 = pnand %p163_p6, %p160_p5 }
  0xe8   :  { %168 = shalt.err (!%p165_p7)
}
  0xe9   :  { %s175_s5 = smov 128   ;;  %s176_s6 = smov 8  }
  0xea   :  { %116 = dma.vmem_to_hbm [thread:$0]  %s111_s25, 256, %s233_s4, [#allocation3], %s175_s5, %s175_s5, %s176_s6  }
  0xeb   :  { %169 = dma.done.wait [#allocation3], 256  }
  0xec   :  { %170 = vsyncadd [#allocation3], 4294967040 }
  0xed   :  { %120 = vsyncpa [#allocation3], 1 }

</bundles_post_ra>
